<compile_context>
chip_gen: v7x
topology: tpu7x:2x2x1
jax: 0.10.0
libtpu: 0.0.40
codegen_flags: <defaults>
</compile_context>

<pallas_src>
import jax
import jax.numpy as jnp
from jax.experimental import pallas as pl
from jax.experimental.pallas import tpu as pltpu


def _round_up(x, m):
    return ((x + m - 1) // m) * m


def downsample_forward(x_nchw, weight, bias):
    """Conv2d(C, C, kernel_size=4, stride=2, padding=1).

    x_nchw: (N, C, H, W); weight: (C, C, 4, 4) [Co, Ci, KH, KW]; bias: (C,).
    Returns (N, C, H//2, W//2) in x_nchw.dtype.
    """
    N, C, H, W = x_nchw.shape
    KH = KW = 4
    assert H % 2 == 0 and W % 2 == 0, "Downsample expects even H, W"
    # TODO(synk): odd H/W would need one extra pad row/col before the parity split.
    OH, OW = H // 2, W // 2                 # == (H + 2 - 4)//2 + 1 for even H
    Co = C
    out_dtype = x_nchw.dtype

    # ---------------- XLA glue (O(input) passes, no im2col blow-up) ----------
    x = jnp.transpose(x_nchw, (0, 2, 3, 1)).astype(jnp.bfloat16)     # (N,H,W,C)
    x_pad = jnp.pad(x, ((0, 0), (1, 1), (1, 1), (0, 0)))             # (N,2A,2B,C)

    # Parity split + flatten: plane[2*ra+rb][n, a*B + b, c] = x_pad[n, 2a+ra, 2b+rb, c]
    A, B = OH + 1, OW + 1
    x_par = x_pad.reshape(N, A, 2, B, 2, C)
    x_par = jnp.transpose(x_par, (2, 4, 0, 1, 3, 5))                 # (2,2,N,A,B,C)
    x_par = x_par.reshape(4, N, A * B, C)
    Rp = A * B
    Rp_pad = _round_up(Rp + 1, 8)  # +1: the (kh//2,kw//2)=(1,1) taps touch flat idx Rp
    x_par = jnp.pad(x_par, ((0, 0), (0, 0), (0, Rp_pad - Rp), (0, 0)))

    # weight (Co,Ci,KH,KW) -> 16 per-tap (Ci,Co) matrices; bf16 operands, f32 acc.
    w_taps = jnp.transpose(weight, (2, 3, 1, 0)).reshape(KH * KW, C, Co)
    w_taps = w_taps.astype(jnp.bfloat16)
    b2 = bias.reshape(1, Co).astype(jnp.float32)

    # The kernel computes OW+1 columns per output row (flat M = OH*B); the last
    # column of each row is junk and is sliced off after the call.
    Mout = OH * B

    # ---------------- Pallas kernel: one image per grid step -----------------
    # TODO(synk): for very large spatial sizes (e.g. 256x256 inputs) band the
    # flat (row,col) axis over a second grid dim instead of one image per step.
    # TODO(synk): for C << 128 (like this C=4 smoke test) lane utilization is
    # low; folding OW into lanes (or lax.conv fallback) would help such layers.
    def kernel(x_ref, w_ref, b_ref, o_ref):
        # x_ref: (4, 1, Rp_pad, C) bf16   parity planes of one padded image
        # w_ref: (16, C, Co)       bf16   per-tap weights (VMEM-resident)
        # b_ref: (1, Co)           f32
        # o_ref: (1, Mout, Co)     out_dtype
        acc = jnp.zeros((Mout, Co), jnp.float32)
        for kh in range(KH):
            for kw in range(KW):
                par = 2 * (kh % 2) + (kw % 2)
                start = (kh // 2) * B + (kw // 2)
                patch = x_ref[par, 0, pl.ds(start, Mout), :]         # (Mout, C)
                acc = acc + jnp.dot(patch, w_ref[kh * KW + kw],
                                    preferred_element_type=jnp.float32)
        o_ref[0] = (acc + b_ref[...]).astype(o_ref.dtype)

    cost = pl.CostEstimate(
        flops=2 * N * Mout * KH * KW * C * Co,
        transcendentals=0,
        bytes_accessed=int(x_par.size * 2 + w_taps.size * 2 + b2.size * 4
                           + N * Mout * Co * out_dtype.itemsize),
    )

    # Per-step VMEM (2x double-buffered input block + output block + resident
    # weights/bias + f32 accumulator) stays well under the 32 MiB scoped
    # default on v5e/v6e/v7x, so no vmem_limit_bytes request is made.
    out_flat = pl.pallas_call(
        kernel,
        out_shape=jax.ShapeDtypeStruct((N, Mout, Co), out_dtype),
        grid_spec=pltpu.PrefetchScalarGridSpec(
            num_scalar_prefetch=0,
            grid=(N,),
            in_specs=[
                pl.BlockSpec((4, 1, Rp_pad, C), lambda n: (0, n, 0, 0)),
                pl.BlockSpec((KH * KW, C, Co), lambda n: (0, 0, 0)),
                pl.BlockSpec((1, Co), lambda n: (0, 0)),
            ],
            out_specs=pl.BlockSpec((1, Mout, Co), lambda n: (n, 0, 0)),
        ),
        compiler_params=pltpu.CompilerParams(
            dimension_semantics=("parallel",),   # N >= 2 keeps both v7x TCs busy
        ),
        cost_estimate=cost,
    )(x_par, w_taps, b2)

    # ---------------- XLA glue: drop junk column, back to NCHW ---------------
    # TODO(synk): if the surrounding UNet runs NHWC/bf16, return
    # out_flat.reshape(N, OH, B, Co)[:, :, :OW, :] directly and skip this
    # transpose (saves a full HBM pass of the output).
    out = out_flat.reshape(N, OH, B, Co)[:, :, :OW, :]
    return jnp.transpose(out, (0, 3, 1, 2)).astype(out_dtype)


if __name__ == "__main__":
    key = jax.random.PRNGKey(0)
    k_x, k_w, k_b = jax.random.split(key, 3)

    N, C, H, W = 2, 4, 16, 16
    x = jax.random.normal(k_x, (N, C, H, W), dtype=jnp.float32)

    # parameter init matching nn.Conv2d(C, C, 4, stride=2, padding=1) shapes
    fan_in = C * 4 * 4
    bound = 1.0 / (fan_in ** 0.5)
    weight = jax.random.uniform(k_w, (C, C, 4, 4), minval=-bound, maxval=bound,
                                dtype=jnp.float32)
    bias = jax.random.uniform(k_b, (C,), minval=-bound, maxval=bound,
                              dtype=jnp.float32)

    out = jax.block_until_ready(downsample_forward(x, weight, bias))

    # Reference: XLA conv on the same bf16-quantized operands (the kernel feeds
    # the MXU bf16 inputs with f32 accumulation -> intentionally not bit-exact
    # with PyTorch's f32 Conv2d).
    xq = x.astype(jnp.bfloat16).astype(jnp.float32)
    wq = weight.astype(jnp.bfloat16).astype(jnp.float32)
    ref = jax.lax.conv_general_dilated(
        xq, wq, window_strides=(2, 2), padding=((1, 1), (1, 1)),
        dimension_numbers=("NCHW", "OIHW", "NCHW"),
        precision=jax.lax.Precision.HIGHEST,
    ) + bias.reshape(1, C, 1, 1)

    assert out.shape == (N, C, H // 2, W // 2)
    assert jnp.allclose(out, ref, atol=5e-3, rtol=5e-3)
    print("KERNEL_OK")
</pallas_src>

<mosaic_0001>
module attributes {stable_mosaic.version = 11 : i64} {
  func.func @kernel(%arg0: i32, %arg1: memref<4x1x88x4xbf16, #tpu.memory_space<vmem>>, %arg2: memref<16x4x4xbf16, #tpu.memory_space<vmem>>, %arg3: memref<1x4xf32, #tpu.memory_space<vmem>>, %arg4: memref<1x72x4xf32, #tpu.memory_space<vmem>>) attributes {dimension_semantics = [#tpu.dimension_semantics<parallel>], iteration_bounds = array<i64: 2>, scalar_prefetch = 0 : i64, scratch_operands = 0 : i64, tpu.core_type = #tpu.core_type<tc>, window_params = [{transform_indices = @transform_0, window_bounds = array<i64: 4, 1, 88, 4>}, {pipeline_mode = #tpu.pipeline_mode<synchronous>, transform_indices = @transform_1, window_bounds = array<i64: 16, 4, 4>}, {pipeline_mode = #tpu.pipeline_mode<synchronous>, transform_indices = @transform_2, window_bounds = array<i64: 1, 4>}, {transform_indices = @transform_3, window_bounds = array<i64: 1, 72, 4>}]} {
    %cst = arith.constant 0.000000e+00 : f32
    %0 = vector.broadcast %cst : f32 to vector<72x4xf32>
    %c0 = arith.constant 0 : index
    %c0_0 = arith.constant 0 : index
    %c0_1 = arith.constant 0 : index
    %c0_2 = arith.constant 0 : index
    %1 = vector.load %arg1[%c0, %c0_0, %c0_1, %c0_2] : memref<4x1x88x4xbf16, #tpu.memory_space<vmem>>, vector<1x1x72x4xbf16>
    %2 = vector.shape_cast %1 : vector<1x1x72x4xbf16> to vector<72x4xbf16>
    %c0_3 = arith.constant 0 : index
    %c0_4 = arith.constant 0 : index
    %c0_5 = arith.constant 0 : index
    %3 = vector.load %arg2[%c0_3, %c0_4, %c0_5] : memref<16x4x4xbf16, #tpu.memory_space<vmem>>, vector<1x4x4xbf16>
    %4 = vector.shape_cast %3 : vector<1x4x4xbf16> to vector<4x4xbf16>
    %cst_6 = arith.constant dense<0.000000e+00> : vector<72x4xf32>
    %5 = tpu.matmul %2, %4, %cst_6 {dimension_numbers = #tpu.dot_dimension_numbers<[1], [0], [0], [1], [0, 0, 1, 1], [], []>} : vector<72x4xbf16>, vector<4x4xbf16>, vector<72x4xf32> -> vector<72x4xf32>
    %6 = arith.addf %0, %5 : vector<72x4xf32>
    %c1 = arith.constant 1 : index
    %c0_7 = arith.constant 0 : index
    %c0_8 = arith.constant 0 : index
    %c0_9 = arith.constant 0 : index
    %7 = vector.load %arg1[%c1, %c0_7, %c0_8, %c0_9] : memref<4x1x88x4xbf16, #tpu.memory_space<vmem>>, vector<1x1x72x4xbf16>
    %8 = vector.shape_cast %7 : vector<1x1x72x4xbf16> to vector<72x4xbf16>
    %c1_10 = arith.constant 1 : index
    %c0_11 = arith.constant 0 : index
    %c0_12 = arith.constant 0 : index
    %9 = vector.load %arg2[%c1_10, %c0_11, %c0_12] : memref<16x4x4xbf16, #tpu.memory_space<vmem>>, vector<1x4x4xbf16>
    %10 = vector.shape_cast %9 : vector<1x4x4xbf16> to vector<4x4xbf16>
    %cst_13 = arith.constant dense<0.000000e+00> : vector<72x4xf32>
    %11 = tpu.matmul %8, %10, %cst_13 {dimension_numbers = #tpu.dot_dimension_numbers<[1], [0], [0], [1], [0, 0, 1, 1], [], []>} : vector<72x4xbf16>, vector<4x4xbf16>, vector<72x4xf32> -> vector<72x4xf32>
    %12 = arith.addf %6, %11 : vector<72x4xf32>
    %c0_14 = arith.constant 0 : index
    %c0_15 = arith.constant 0 : index
    %c1_16 = arith.constant 1 : index
    %c0_17 = arith.constant 0 : index
    %13 = vector.load %arg1[%c0_14, %c0_15, %c1_16, %c0_17] : memref<4x1x88x4xbf16, #tpu.memory_space<vmem>>, vector<1x1x72x4xbf16>
    %14 = vector.shape_cast %13 : vector<1x1x72x4xbf16> to vector<72x4xbf16>
    %c2 = arith.constant 2 : index
    %c0_18 = arith.constant 0 : index
    %c0_19 = arith.constant 0 : index
    %15 = vector.load %arg2[%c2, %c0_18, %c0_19] : memref<16x4x4xbf16, #tpu.memory_space<vmem>>, vector<1x4x4xbf16>
    %16 = vector.shape_cast %15 : vector<1x4x4xbf16> to vector<4x4xbf16>
    %cst_20 = arith.constant dense<0.000000e+00> : vector<72x4xf32>
    %17 = tpu.matmul %14, %16, %cst_20 {dimension_numbers = #tpu.dot_dimension_numbers<[1], [0], [0], [1], [0, 0, 1, 1], [], []>} : vector<72x4xbf16>, vector<4x4xbf16>, vector<72x4xf32> -> vector<72x4xf32>
    %18 = arith.addf %12, %17 : vector<72x4xf32>
    %c1_21 = arith.constant 1 : index
    %c0_22 = arith.constant 0 : index
    %c1_23 = arith.constant 1 : index
    %c0_24 = arith.constant 0 : index
    %19 = vector.load %arg1[%c1_21, %c0_22, %c1_23, %c0_24] : memref<4x1x88x4xbf16, #tpu.memory_space<vmem>>, vector<1x1x72x4xbf16>
    %20 = vector.shape_cast %19 : vector<1x1x72x4xbf16> to vector<72x4xbf16>
    %c3 = arith.constant 3 : index
    %c0_25 = arith.constant 0 : index
    %c0_26 = arith.constant 0 : index
    %21 = vector.load %arg2[%c3, %c0_25, %c0_26] : memref<16x4x4xbf16, #tpu.memory_space<vmem>>, vector<1x4x4xbf16>
    %22 = vector.shape_cast %21 : vector<1x4x4xbf16> to vector<4x4xbf16>
    %cst_27 = arith.constant dense<0.000000e+00> : vector<72x4xf32>
    %23 = tpu.matmul %20, %22, %cst_27 {dimension_numbers = #tpu.dot_dimension_numbers<[1], [0], [0], [1], [0, 0, 1, 1], [], []>} : vector<72x4xbf16>, vector<4x4xbf16>, vector<72x4xf32> -> vector<72x4xf32>
    %24 = arith.addf %18, %23 : vector<72x4xf32>
    %c2_28 = arith.constant 2 : index
    %c0_29 = arith.constant 0 : index
    %c0_30 = arith.constant 0 : index
    %c0_31 = arith.constant 0 : index
    %25 = vector.load %arg1[%c2_28, %c0_29, %c0_30, %c0_31] : memref<4x1x88x4xbf16, #tpu.memory_space<vmem>>, vector<1x1x72x4xbf16>
    %26 = vector.shape_cast %25 : vector<1x1x72x4xbf16> to vector<72x4xbf16>
    %c4 = arith.constant 4 : index
    %c0_32 = arith.constant 0 : index
    %c0_33 = arith.constant 0 : index
    %27 = vector.load %arg2[%c4, %c0_32, %c0_33] : memref<16x4x4xbf16, #tpu.memory_space<vmem>>, vector<1x4x4xbf16>
    %28 = vector.shape_cast %27 : vector<1x4x4xbf16> to vector<4x4xbf16>
    %cst_34 = arith.constant dense<0.000000e+00> : vector<72x4xf32>
    %29 = tpu.matmul %26, %28, %cst_34 {dimension_numbers = #tpu.dot_dimension_numbers<[1], [0], [0], [1], [0, 0, 1, 1], [], []>} : vector<72x4xbf16>, vector<4x4xbf16>, vector<72x4xf32> -> vector<72x4xf32>
    %30 = arith.addf %24, %29 : vector<72x4xf32>
    %c3_35 = arith.constant 3 : index
    %c0_36 = arith.constant 0 : index
    %c0_37 = arith.constant 0 : index
    %c0_38 = arith.constant 0 : index
    %31 = vector.load %arg1[%c3_35, %c0_36, %c0_37, %c0_38] : memref<4x1x88x4xbf16, #tpu.memory_space<vmem>>, vector<1x1x72x4xbf16>
    %32 = vector.shape_cast %31 : vector<1x1x72x4xbf16> to vector<72x4xbf16>
    %c5 = arith.constant 5 : index
    %c0_39 = arith.constant 0 : index
    %c0_40 = arith.constant 0 : index
    %33 = vector.load %arg2[%c5, %c0_39, %c0_40] : memref<16x4x4xbf16, #tpu.memory_space<vmem>>, vector<1x4x4xbf16>
    %34 = vector.shape_cast %33 : vector<1x4x4xbf16> to vector<4x4xbf16>
    %cst_41 = arith.constant dense<0.000000e+00> : vector<72x4xf32>
    %35 = tpu.matmul %32, %34, %cst_41 {dimension_numbers = #tpu.dot_dimension_numbers<[1], [0], [0], [1], [0, 0, 1, 1], [], []>} : vector<72x4xbf16>, vector<4x4xbf16>, vector<72x4xf32> -> vector<72x4xf32>
    %36 = arith.addf %30, %35 : vector<72x4xf32>
    %c2_42 = arith.constant 2 : index
    %c0_43 = arith.constant 0 : index
    %c1_44 = arith.constant 1 : index
    %c0_45 = arith.constant 0 : index
    %37 = vector.load %arg1[%c2_42, %c0_43, %c1_44, %c0_45] : memref<4x1x88x4xbf16, #tpu.memory_space<vmem>>, vector<1x1x72x4xbf16>
    %38 = vector.shape_cast %37 : vector<1x1x72x4xbf16> to vector<72x4xbf16>
    %c6 = arith.constant 6 : index
    %c0_46 = arith.constant 0 : index
    %c0_47 = arith.constant 0 : index
    %39 = vector.load %arg2[%c6, %c0_46, %c0_47] : memref<16x4x4xbf16, #tpu.memory_space<vmem>>, vector<1x4x4xbf16>
    %40 = vector.shape_cast %39 : vector<1x4x4xbf16> to vector<4x4xbf16>
    %cst_48 = arith.constant dense<0.000000e+00> : vector<72x4xf32>
    %41 = tpu.matmul %38, %40, %cst_48 {dimension_numbers = #tpu.dot_dimension_numbers<[1], [0], [0], [1], [0, 0, 1, 1], [], []>} : vector<72x4xbf16>, vector<4x4xbf16>, vector<72x4xf32> -> vector<72x4xf32>
    %42 = arith.addf %36, %41 : vector<72x4xf32>
    %c3_49 = arith.constant 3 : index
    %c0_50 = arith.constant 0 : index
    %c1_51 = arith.constant 1 : index
    %c0_52 = arith.constant 0 : index
    %43 = vector.load %arg1[%c3_49, %c0_50, %c1_51, %c0_52] : memref<4x1x88x4xbf16, #tpu.memory_space<vmem>>, vector<1x1x72x4xbf16>
    %44 = vector.shape_cast %43 : vector<1x1x72x4xbf16> to vector<72x4xbf16>
    %c7 = arith.constant 7 : index
    %c0_53 = arith.constant 0 : index
    %c0_54 = arith.constant 0 : index
    %45 = vector.load %arg2[%c7, %c0_53, %c0_54] : memref<16x4x4xbf16, #tpu.memory_space<vmem>>, vector<1x4x4xbf16>
    %46 = vector.shape_cast %45 : vector<1x4x4xbf16> to vector<4x4xbf16>
    %cst_55 = arith.constant dense<0.000000e+00> : vector<72x4xf32>
    %47 = tpu.matmul %44, %46, %cst_55 {dimension_numbers = #tpu.dot_dimension_numbers<[1], [0], [0], [1], [0, 0, 1, 1], [], []>} : vector<72x4xbf16>, vector<4x4xbf16>, vector<72x4xf32> -> vector<72x4xf32>
    %48 = arith.addf %42, %47 : vector<72x4xf32>
    %c0_56 = arith.constant 0 : index
    %c0_57 = arith.constant 0 : index
    %c9 = arith.constant 9 : index
    %c0_58 = arith.constant 0 : index
    %49 = vector.load %arg1[%c0_56, %c0_57, %c9, %c0_58] : memref<4x1x88x4xbf16, #tpu.memory_space<vmem>>, vector<1x1x72x4xbf16>
    %50 = vector.shape_cast %49 : vector<1x1x72x4xbf16> to vector<72x4xbf16>
    %c8 = arith.constant 8 : index
    %c0_59 = arith.constant 0 : index
    %c0_60 = arith.constant 0 : index
    %51 = vector.load %arg2[%c8, %c0_59, %c0_60] : memref<16x4x4xbf16, #tpu.memory_space<vmem>>, vector<1x4x4xbf16>
    %52 = vector.shape_cast %51 : vector<1x4x4xbf16> to vector<4x4xbf16>
    %cst_61 = arith.constant dense<0.000000e+00> : vector<72x4xf32>
    %53 = tpu.matmul %50, %52, %cst_61 {dimension_numbers = #tpu.dot_dimension_numbers<[1], [0], [0], [1], [0, 0, 1, 1], [], []>} : vector<72x4xbf16>, vector<4x4xbf16>, vector<72x4xf32> -> vector<72x4xf32>
    %54 = arith.addf %48, %53 : vector<72x4xf32>
    %c1_62 = arith.constant 1 : index
    %c0_63 = arith.constant 0 : index
    %c9_64 = arith.constant 9 : index
    %c0_65 = arith.constant 0 : index
    %55 = vector.load %arg1[%c1_62, %c0_63, %c9_64, %c0_65] : memref<4x1x88x4xbf16, #tpu.memory_space<vmem>>, vector<1x1x72x4xbf16>
    %56 = vector.shape_cast %55 : vector<1x1x72x4xbf16> to vector<72x4xbf16>
    %c9_66 = arith.constant 9 : index
    %c0_67 = arith.constant 0 : index
    %c0_68 = arith.constant 0 : index
    %57 = vector.load %arg2[%c9_66, %c0_67, %c0_68] : memref<16x4x4xbf16, #tpu.memory_space<vmem>>, vector<1x4x4xbf16>
    %58 = vector.shape_cast %57 : vector<1x4x4xbf16> to vector<4x4xbf16>
    %cst_69 = arith.constant dense<0.000000e+00> : vector<72x4xf32>
    %59 = tpu.matmul %56, %58, %cst_69 {dimension_numbers = #tpu.dot_dimension_numbers<[1], [0], [0], [1], [0, 0, 1, 1], [], []>} : vector<72x4xbf16>, vector<4x4xbf16>, vector<72x4xf32> -> vector<72x4xf32>
    %60 = arith.addf %54, %59 : vector<72x4xf32>
    %c0_70 = arith.constant 0 : index
    %c0_71 = arith.constant 0 : index
    %c10 = arith.constant 10 : index
    %c0_72 = arith.constant 0 : index
    %61 = vector.load %arg1[%c0_70, %c0_71, %c10, %c0_72] : memref<4x1x88x4xbf16, #tpu.memory_space<vmem>>, vector<1x1x72x4xbf16>
    %62 = vector.shape_cast %61 : vector<1x1x72x4xbf16> to vector<72x4xbf16>
    %c10_73 = arith.constant 10 : index
    %c0_74 = arith.constant 0 : index
    %c0_75 = arith.constant 0 : index
    %63 = vector.load %arg2[%c10_73, %c0_74, %c0_75] : memref<16x4x4xbf16, #tpu.memory_space<vmem>>, vector<1x4x4xbf16>
    %64 = vector.shape_cast %63 : vector<1x4x4xbf16> to vector<4x4xbf16>
    %cst_76 = arith.constant dense<0.000000e+00> : vector<72x4xf32>
    %65 = tpu.matmul %62, %64, %cst_76 {dimension_numbers = #tpu.dot_dimension_numbers<[1], [0], [0], [1], [0, 0, 1, 1], [], []>} : vector<72x4xbf16>, vector<4x4xbf16>, vector<72x4xf32> -> vector<72x4xf32>
    %66 = arith.addf %60, %65 : vector<72x4xf32>
    %c1_77 = arith.constant 1 : index
    %c0_78 = arith.constant 0 : index
    %c10_79 = arith.constant 10 : index
    %c0_80 = arith.constant 0 : index
    %67 = vector.load %arg1[%c1_77, %c0_78, %c10_79, %c0_80] : memref<4x1x88x4xbf16, #tpu.memory_space<vmem>>, vector<1x1x72x4xbf16>
    %68 = vector.shape_cast %67 : vector<1x1x72x4xbf16> to vector<72x4xbf16>
    %c11 = arith.constant 11 : index
    %c0_81 = arith.constant 0 : index
    %c0_82 = arith.constant 0 : index
    %69 = vector.load %arg2[%c11, %c0_81, %c0_82] : memref<16x4x4xbf16, #tpu.memory_space<vmem>>, vector<1x4x4xbf16>
    %70 = vector.shape_cast %69 : vector<1x4x4xbf16> to vector<4x4xbf16>
    %cst_83 = arith.constant dense<0.000000e+00> : vector<72x4xf32>
    %71 = tpu.matmul %68, %70, %cst_83 {dimension_numbers = #tpu.dot_dimension_numbers<[1], [0], [0], [1], [0, 0, 1, 1], [], []>} : vector<72x4xbf16>, vector<4x4xbf16>, vector<72x4xf32> -> vector<72x4xf32>
    %72 = arith.addf %66, %71 : vector<72x4xf32>
    %c2_84 = arith.constant 2 : index
    %c0_85 = arith.constant 0 : index
    %c9_86 = arith.constant 9 : index
    %c0_87 = arith.constant 0 : index
    %73 = vector.load %arg1[%c2_84, %c0_85, %c9_86, %c0_87] : memref<4x1x88x4xbf16, #tpu.memory_space<vmem>>, vector<1x1x72x4xbf16>
    %74 = vector.shape_cast %73 : vector<1x1x72x4xbf16> to vector<72x4xbf16>
    %c12 = arith.constant 12 : index
    %c0_88 = arith.constant 0 : index
    %c0_89 = arith.constant 0 : index
    %75 = vector.load %arg2[%c12, %c0_88, %c0_89] : memref<16x4x4xbf16, #tpu.memory_space<vmem>>, vector<1x4x4xbf16>
    %76 = vector.shape_cast %75 : vector<1x4x4xbf16> to vector<4x4xbf16>
    %cst_90 = arith.constant dense<0.000000e+00> : vector<72x4xf32>
    %77 = tpu.matmul %74, %76, %cst_90 {dimension_numbers = #tpu.dot_dimension_numbers<[1], [0], [0], [1], [0, 0, 1, 1], [], []>} : vector<72x4xbf16>, vector<4x4xbf16>, vector<72x4xf32> -> vector<72x4xf32>
    %78 = arith.addf %72, %77 : vector<72x4xf32>
    %c3_91 = arith.constant 3 : index
    %c0_92 = arith.constant 0 : index
    %c9_93 = arith.constant 9 : index
    %c0_94 = arith.constant 0 : index
    %79 = vector.load %arg1[%c3_91, %c0_92, %c9_93, %c0_94] : memref<4x1x88x4xbf16, #tpu.memory_space<vmem>>, vector<1x1x72x4xbf16>
    %80 = vector.shape_cast %79 : vector<1x1x72x4xbf16> to vector<72x4xbf16>
    %c13 = arith.constant 13 : index
    %c0_95 = arith.constant 0 : index
    %c0_96 = arith.constant 0 : index
    %81 = vector.load %arg2[%c13, %c0_95, %c0_96] : memref<16x4x4xbf16, #tpu.memory_space<vmem>>, vector<1x4x4xbf16>
    %82 = vector.shape_cast %81 : vector<1x4x4xbf16> to vector<4x4xbf16>
    %cst_97 = arith.constant dense<0.000000e+00> : vector<72x4xf32>
    %83 = tpu.matmul %80, %82, %cst_97 {dimension_numbers = #tpu.dot_dimension_numbers<[1], [0], [0], [1], [0, 0, 1, 1], [], []>} : vector<72x4xbf16>, vector<4x4xbf16>, vector<72x4xf32> -> vector<72x4xf32>
    %84 = arith.addf %78, %83 : vector<72x4xf32>
    %c2_98 = arith.constant 2 : index
    %c0_99 = arith.constant 0 : index
    %c10_100 = arith.constant 10 : index
    %c0_101 = arith.constant 0 : index
    %85 = vector.load %arg1[%c2_98, %c0_99, %c10_100, %c0_101] : memref<4x1x88x4xbf16, #tpu.memory_space<vmem>>, vector<1x1x72x4xbf16>
    %86 = vector.shape_cast %85 : vector<1x1x72x4xbf16> to vector<72x4xbf16>
    %c14 = arith.constant 14 : index
    %c0_102 = arith.constant 0 : index
    %c0_103 = arith.constant 0 : index
    %87 = vector.load %arg2[%c14, %c0_102, %c0_103] : memref<16x4x4xbf16, #tpu.memory_space<vmem>>, vector<1x4x4xbf16>
    %88 = vector.shape_cast %87 : vector<1x4x4xbf16> to vector<4x4xbf16>
    %cst_104 = arith.constant dense<0.000000e+00> : vector<72x4xf32>
    %89 = tpu.matmul %86, %88, %cst_104 {dimension_numbers = #tpu.dot_dimension_numbers<[1], [0], [0], [1], [0, 0, 1, 1], [], []>} : vector<72x4xbf16>, vector<4x4xbf16>, vector<72x4xf32> -> vector<72x4xf32>
    %90 = arith.addf %84, %89 : vector<72x4xf32>
    %c3_105 = arith.constant 3 : index
    %c0_106 = arith.constant 0 : index
    %c10_107 = arith.constant 10 : index
    %c0_108 = arith.constant 0 : index
    %91 = vector.load %arg1[%c3_105, %c0_106, %c10_107, %c0_108] : memref<4x1x88x4xbf16, #tpu.memory_space<vmem>>, vector<1x1x72x4xbf16>
    %92 = vector.shape_cast %91 : vector<1x1x72x4xbf16> to vector<72x4xbf16>
    %c15 = arith.constant 15 : index
    %c0_109 = arith.constant 0 : index
    %c0_110 = arith.constant 0 : index
    %93 = vector.load %arg2[%c15, %c0_109, %c0_110] : memref<16x4x4xbf16, #tpu.memory_space<vmem>>, vector<1x4x4xbf16>
    %94 = vector.shape_cast %93 : vector<1x4x4xbf16> to vector<4x4xbf16>
    %cst_111 = arith.constant dense<0.000000e+00> : vector<72x4xf32>
    %95 = tpu.matmul %92, %94, %cst_111 {dimension_numbers = #tpu.dot_dimension_numbers<[1], [0], [0], [1], [0, 0, 1, 1], [], []>} : vector<72x4xbf16>, vector<4x4xbf16>, vector<72x4xf32> -> vector<72x4xf32>
    %96 = arith.addf %90, %95 : vector<72x4xf32>
    %c0_112 = arith.constant 0 : index
    %c0_113 = arith.constant 0 : index
    %97 = vector.load %arg3[%c0_112, %c0_113] : memref<1x4xf32, #tpu.memory_space<vmem>>, vector<1x4xf32>
    %98 = vector.broadcast %97 : vector<1x4xf32> to vector<72x4xf32>
    %99 = arith.addf %96, %98 : vector<72x4xf32>
    %c0_114 = arith.constant 0 : index
    %c0_115 = arith.constant 0 : index
    %c0_116 = arith.constant 0 : index
    %100 = vector.load %arg4[%c0_114, %c0_115, %c0_116] : memref<1x72x4xf32, #tpu.memory_space<vmem>>, vector<1x72x4xf32>
    %101 = vector.shape_cast %100 : vector<1x72x4xf32> to vector<72x4xf32>
    %102 = vector.shape_cast %99 : vector<72x4xf32> to vector<1x72x4xf32>
    tpu.vector_store %arg4[%c0_114, %c0_115, %c0_116], %102 {strides = array<i32>} : memref<1x72x4xf32, #tpu.memory_space<vmem>>, vector<1x72x4xf32>,
    return
  }
  func.func @transform_0(%arg0: i32) -> (i32, i32, i32, i32) {
    %c0_i32 = arith.constant 0 : i32
    %c0_i32_0 = arith.constant 0 : i32
    %c0_i32_1 = arith.constant 0 : i32
    %c0_i32_2 = arith.constant 0 : i32
    return %c0_i32, %arg0, %c0_i32_0, %c0_i32_1 : i32, i32, i32, i32
  }
  func.func @transform_1(%arg0: i32) -> (i32, i32, i32) {
    %c0_i32 = arith.constant 0 : i32
    %c0_i32_0 = arith.constant 0 : i32
    %c0_i32_1 = arith.constant 0 : i32
    %c0_i32_2 = arith.constant 0 : i32
    return %c0_i32, %c0_i32_0, %c0_i32_1 : i32, i32, i32
  }
  func.func @transform_2(%arg0: i32) -> (i32, i32) {
    %c0_i32 = arith.constant 0 : i32
    %c0_i32_0 = arith.constant 0 : i32
    %c0_i32_1 = arith.constant 0 : i32
    return %c0_i32, %c0_i32_0 : i32, i32
  }
  func.func @transform_3(%arg0: i32) -> (i32, i32, i32) {
    %c0_i32 = arith.constant 0 : i32
    %c0_i32_0 = arith.constant 0 : i32
    %c0_i32_1 = arith.constant 0 : i32
    return %arg0, %c0_i32, %c0_i32_0 : i32, i32, i32
  }
}

</mosaic_0001>

<bundles_post_ra>
// kernel: tpu_custom_call.1
= control target key start
LH: loop header
LB: loop body
LE: loop exit
PB: predicated region body
PF: predicated region fallthrough
CT: control target
= control target key end

     0   :  { %s3695_s12 = smov 0   ;;  %s3697_s13 = smov 0   ;;  %s4447_s0 = inlined_call_operand.vmem [shape: bf16[4,2,88,4], index: 0, kind: input, shape index: {}]   ;;  %s4448_s1 = inlined_call_operand.vmem [shape: bf16[16,4,4], index: 1, kind: input, shape index: {}]   ;;  %s4449_s2 = inlined_call_operand.vmem [shape: f32[1,4], index: 2, kind: input, shape index: {}]   ;;  %s4450_s3 = inlined_call_operand.vmem [shape: f32[2,72,4], index: 3, kind: output, shape index: {}]  }
   0x1   :  { %s3699_s14 = smov 0  }
   0x2 LB: > { %s2848_s15 = sadd.s32 4294967295, %s3671_s14   ;;  %s3712_s16 = sadd.s32 1, %s3671_s14   ;;  %s3671_s14 = sphi %s3699_s14, %s4453_s14   ;;  %s3667_s13 = sphi %s3697_s13, %s4452_s13   ;;  %s3663_s12 = sphi %s3695_s12, %s4451_s12  }
   0x3   : > { %s17_s17 = ssub.s32 %s3671_s14, %s3712_s16  ;;  %s20_s18 = sadd.s32 1, %s3667_s13 }
   0x4   : > { %p18_p0 = scmp.eq.s32.totalorder %s17_s17, 0  ;;  %p27_p1 = scmp.ne.s32.totalorder %s3667_s13, %s3663_s12 }
   0x5   : > { %p28_p2 = scmp.eq.s32.totalorder %s3671_s14, 0  ;;  %p2851_p4 = scmp.ge.s32.totalorder %s3671_s14, 2 }
   0x6   : > { %s3721_s19 = scalar_select %p18_p0, %s3667_s13, %s20_s18  }
   0x7   : > { %p29_p3 = por %p28_p2, %p27_p1  ;;  %127 = sbr.rel (%p2851_p4) target bundleno = 31 (0x1f), region = 24 }
   0xe   : > { %130 = sbr.rel (!%p29_p3) target bundleno = 31 (0x1f), region = 28  ;;  %s132_s20 = sand.u32 (%p29_p3), 1, %s3667_s13  }
   0xf   : > { %s3556_s21 = smul.u32 (%p29_p3), 44, %s3671_s14 }
  0x10   : > { %s3555_s22 = smul.u32 (%p29_p3), 176, %s132_s20 }
  0x11   : > { %s3729_s25 = scalar_lea.vmem (%p29_p3), %s4447_s0, %s3556_s21 }
  0x12   : > { %v153_v0 = vld [vmem:[%s3729_s25] sm:$0xff] (%p29_p3)   ;;  %v157_v1 = vld [vmem:[%s3729_s25 + $0x8] sm:$0xff] (%p29_p3)   ;;  %v161_v2 = vld [vmem:[%s3729_s25 + $0x10] sm:$0xff] (%p29_p3)   ;;  %s3734_s26 = scalar_lea.vmem (%p29_p3), [#allocation2], %s3555_s22 }
  0x13   : > { %154 = vst [vmem:[%s3734_s26] sm:$0xff] (%p29_p3), %v153_v0   ;;  %158 = vst [vmem:[%s3734_s26 + $0x8] sm:$0xff] (%p29_p3), %v157_v1   ;;  %v165_v3 = vld [vmem:[%s3729_s25 + $0x18] sm:$0xff] (%p29_p3)   ;;  %v169_v4 = vld [vmem:[%s3729_s25 + $0x20] sm:$0xff] (%p29_p3)  }
  0x14   : > { %162 = vst [vmem:[%s3734_s26 + $0x10] sm:$0xff] (%p29_p3), %v161_v2   ;;  %v173_v5 = vld [vmem:[%s3729_s25 + $0x28] sm:$0xf] (%p29_p3)  ;;  %166 = vst [vmem:[%s3734_s26 + $0x18] sm:$0xff] (%p29_p3), %v165_v3   ;;  %v175_v6 = vld [vmem:[%s3729_s25 + $0x58] sm:$0xff] (%p29_p3)  }
  0x15   : > { %170 = vst [vmem:[%s3734_s26 + $0x20] sm:$0xff] %v169_v4   ;;  %174 = vst [vmem:[%s3734_s26 + $0x28] sm:$0xf] %v173_v5  ;;  %v179_v7 = vld [vmem:[%s3729_s25 + $0x60] sm:$0xff]   ;;  %v183_v8 = vld [vmem:[%s3729_s25 + $0x68] sm:$0xff]  }
  0x16   : > { %176 = vst [vmem:[%s3734_s26 + $0x2c] sm:$0xff] %v175_v6   ;;  %180 = vst [vmem:[%s3734_s26 + $0x34] sm:$0xff] %v179_v7   ;;  %v187_v9 = vld [vmem:[%s3729_s25 + $0x70] sm:$0xff]   ;;  %v191_v10 = vld [vmem:[%s3729_s25 + $0x78] sm:$0xff]  }
  0x17   : > { %184 = vst [vmem:[%s3734_s26 + $0x3c] sm:$0xff] %v183_v8   ;;  %v195_v11 = vld [vmem:[%s3729_s25 + $0x80] sm:$0xf]  ;;  %188 = vst [vmem:[%s3734_s26 + $0x44] sm:$0xff] %v187_v9   ;;  %v197_v12 = vld [vmem:[%s3729_s25 + $0xb0] sm:$0xff]  }
  0x18   : > { %192 = vst [vmem:[%s3734_s26 + $0x4c] sm:$0xff] %v191_v10   ;;  %196 = vst [vmem:[%s3734_s26 + $0x54] sm:$0xf] %v195_v11  ;;  %v201_v13 = vld [vmem:[%s3729_s25 + $0xb8] sm:$0xff]   ;;  %v205_v14 = vld [vmem:[%s3729_s25 + $0xc0] sm:$0xff]  }
  0x19   : > { %198 = vst [vmem:[%s3734_s26 + $0x58] sm:$0xff] %v197_v12   ;;  %202 = vst [vmem:[%s3734_s26 + $0x60] sm:$0xff] %v201_v13   ;;  %v209_v15 = vld [vmem:[%s3729_s25 + $0xc8] sm:$0xff]   ;;  %v213_v16 = vld [vmem:[%s3729_s25 + $0xd0] sm:$0xff]  }
  0x1a   : > { %206 = vst [vmem:[%s3734_s26 + $0x68] sm:$0xff] %v205_v14   ;;  %v217_v17 = vld [vmem:[%s3729_s25 + $0xd8] sm:$0xf]  ;;  %210 = vst [vmem:[%s3734_s26 + $0x70] sm:$0xff] %v209_v15   ;;  %v219_v18 = vld [vmem:[%s3729_s25 + $0x108] sm:$0xff]  }
  0x1b   : > { %214 = vst [vmem:[%s3734_s26 + $0x78] sm:$0xff] %v213_v16   ;;  %218 = vst [vmem:[%s3734_s26 + $0x80] sm:$0xf] %v217_v17  ;;  %v223_v19 = vld [vmem:[%s3729_s25 + $0x110] sm:$0xff]   ;;  %v227_v20 = vld [vmem:[%s3729_s25 + $0x118] sm:$0xff]  }
  0x1c   : > { %220 = vst [vmem:[%s3734_s26 + $0x84] sm:$0xff] %v219_v18   ;;  %224 = vst [vmem:[%s3734_s26 + $0x8c] sm:$0xff] %v223_v19   ;;  %v231_v21 = vld [vmem:[%s3729_s25 + $0x120] sm:$0xff]   ;;  %v235_v22 = vld [vmem:[%s3729_s25 + $0x128] sm:$0xff]  }
  0x1d   : > { %228 = vst [vmem:[%s3734_s26 + $0x94] sm:$0xff] %v227_v20   ;;  %v239_v23 = vld [vmem:[%s3729_s25 + $0x130] sm:$0xf]  ;;  %232 = vst [vmem:[%s3734_s26 + $0x9c] sm:$0xff] %v231_v21  }
  0x1e   : > { %236 = vst [vmem:[%s3734_s26 + $0xa4] sm:$0xff] %v235_v22   ;;  %240 = vst [vmem:[%s3734_s26 + $0xac] sm:$0xf] %v239_v23 }
  0x1f PF: > { %p2853_p5 = scmp.ge.s32.totalorder %s3671_s14, 1  ;;  %p350_p6 = scmp.lt.s32.totalorder %s3671_s14, 3 }
  0x21   : > { %p351_p7 = pnand %p2853_p5, %p350_p6 }
  0x22   : > { %v2864_v24 = vld [vmem:[%s4448_s1 + $0x2] sm:$0x3] (!%p351_p7)  ;;  %vm447_vm0 = vcmask (!%p351_p7), 1041408   ;;  %v395_v25 = vld [vmem:[%s4448_s1] sm:$0x3] (!%p351_p7)  ;;  %v3673_v26 = vmov (!%p351_p7), 0.0  }
  0x23   : > { %354 = sbr.rel (%p351_p7) target bundleno = 571 (0x23b), region = 69  ;;  %3203 = vmatprep.subr.bf16.mxu0 (!%p351_p7), %v3673_v26  ;;  %v449_v27 = vsel (!%p351_p7), %vm447_vm0, %v2864_v24, 0  ;;  %3225 = vmatprep.subr.bf16.mxu1 (!%p351_p7), %v3673_v26  ;;  %v562_v28 = vsel (!%p351_p7), %vm447_vm0, %v395_v25, 0  ;;  %s357_s4 = sand.u32 (!%p351_p7), 1, %s3663_s12   ;;  %v2885_v29 = vld [vmem:[%s4448_s1 + $0x4] sm:$0x3] (!%p351_p7) }
  0x24   : > { %3204 = vmatpush3.bf16.msra.mxu0 (!%p351_p7), %v449_v27  ;;  %3226 = vmatpush3.bf16.msra.mxu1 (!%p351_p7), %v562_v28  ;;  %s3557_s5 = smul.u32 (!%p351_p7), 176, %s357_s4  ;;  %vm3674_vm1 = vmmov (!%p351_p7), 0   ;;  %v2906_v30 = vld [vmem:[%s4448_s1 + $0x6] sm:$0x3] (!%p351_p7)  ;;  %vm431_vm2 = vcmask (!%p351_p7), 31744   ;;  %v729_v32 = vsel (!%p351_p7), %vm447_vm0, %v2885_v29, 0 }
  0x25   : > { %3205 = vmatprep.mubr.msk.bf16.mxu0 (!%p351_p7), %vm3674_vm1, %v3673_v26  ;;  %3227 = vmatprep.mubr.msk.bf16.mxu1 (!%p351_p7), %vm3674_vm1, %v3673_v26  ;;  %v904_v34 = vsel (!%p351_p7), %vm447_vm0, %v2906_v30, 0  ;;  %vm673_vm3 = vsmask.f32 (!%p351_p7), 7424  ;;  %v2926_v61 = vld [vmem:[%s4448_s1 + $0x8] sm:$0x3] (!%p351_p7)  ;;  %vm1961_vm4 = vcmask (!%p351_p7), 1046528  }
  0x26   : > { %3247 = vmatprep.subr.bf16.mxu0 (!%p351_p7), %v3673_v26  ;;  %3269 = vmatprep.subr.bf16.mxu1 (!%p351_p7), %v3673_v26  ;;  %s3806_s10 = scalar_lea.vmem (!%p351_p7), [#allocation2], %s3557_s5  ;;  %v2946_v62 = vld [vmem:[%s4448_s1 + $0xa] sm:$0x3] (!%p351_p7)  ;;  %v1038_v3 = vsel (!%p351_p7), %vm447_vm0, %v2926_v61, 0  ;;  %p380_p8 = scmp.lt.s32.totalorder (!%p351_p7), %s2848_s15, 1 }
  0x27   : > { %v3585_v31 = vld [vmem:[%s3806_s10 + $0x2c] sm:$0xff] (!%p351_p7)   ;;  %v3586_v33 = vld [vmem:[%s3806_s10] sm:$0xff] (!%p351_p7)   ;;  %v3587_v35 = vld [vmem:[%s3806_s10 + $0x34] sm:$0xff] (!%p351_p7)   ;;  %v1172_v6 = vsel (!%p351_p7), %vm447_vm0, %v2946_v62, 0 }
  0x28   : > { %3206 = vmatmul.mubr.msk.bf16.vlgmr.msra.gmra.mrb[0].mxu0 (!%p351_p7), %vm431_vm2, %v3585_v31  ;;  %3228 = vmatmul.mubr.msk.bf16.vlgmr.msra.gmra.mrb[0].mxu1 (!%p351_p7), %vm431_vm2, %v3586_v33  ;;  %v3588_v36 = vld [vmem:[%s3806_s10 + $0x8] sm:$0xff] (!%p351_p7)   ;;  %v3589_v37 = vld [vmem:[%s3806_s10 + $0x3c] sm:$0xff] (!%p351_p7)   ;;  %v3590_v38 = vld [vmem:[%s3806_s10 + $0x10] sm:$0xff] (!%p351_p7)  }
  0x29   : > { %3248 = vmatpush3.bf16.msra.mxu0 (!%p351_p7), %v729_v32  ;;  %3270 = vmatpush3.bf16.msra.mxu1 (!%p351_p7), %v904_v34  ;;  %v3591_v39 = vld [vmem:[%s3806_s10 + $0x44] sm:$0xff] (!%p351_p7)   ;;  %v3592_v40 = vld [vmem:[%s3806_s10 + $0x18] sm:$0xff] (!%p351_p7)   ;;  %v3597_v42 = vld [vmem:[%s3806_s10 + $0x2c] sm:$0xff] (!%p351_p7)  }
  0x2a   : > { %3209 = vmatprep.mubr.msk.bf16.mxu0 %vm3674_vm1, %v3673_v26  ;;  %3231 = vmatprep.mubr.msk.bf16.mxu1 %vm3674_vm1, %v3673_v26  ;;  %v3595_v41 = vld [vmem:[%s3806_s10] sm:$0xff]   ;;  %v3596_v43 = vld [vmem:[%s3806_s10 + $0x8] sm:$0xff]   ;;  %v3598_v46 = vld [vmem:[%s3806_s10 + $0x34] sm:$0xff]   ;;  %v852_v47 = vshll.u32 %v3597_v42, 16  ;;  %v850_v52 = vshrl.u32 %v3597_v42, 16  ;;  %s4455_s15 = smov (!%p380_p8, %s2848_s15), 1 }
  0x2b   : > { %3291 = vmatprep.subr.bf16.mxu0 %v3673_v26  ;;  %3313 = vmatprep.subr.bf16.mxu1 %v3673_v26  ;;  %v677_v44 = vshll.u32 %v3595_v41, 16  ;;  %v3593_v45 = vld [vmem:[%s3806_s10 + $0x4c] ss:$0 sps:$4 sm:$0xff]   ;;  %v3594_v48 = vld [vmem:[%s3806_s10 + $0x20] ss:$0 sps:$4 sm:$0xff]   ;;  %v682_v49 = vshll.u32 %v3596_v43, 16 }
  0x2c   : > { %v675_v50 = vshrl.u32 %v3595_v41, 16  ;;  %v854_v53 = vrot.slane %v852_v47, 1  ;;  %v857_v54 = vshll.u32 %v3598_v46, 16  ;;  %v3599_v56 = vld [vmem:[%s3806_s10 + $0x10] sm:$0xff]   ;;  %v3600_v60 = vld [vmem:[%s3806_s10 + $0x3c] sm:$0xff]   ;;  %v686_v0 = vshrl.u32 %v3596_v43, 16 }
  0x2d   : > { %v679_v51 = vrot.slane %v677_v44, 1  ;;  %v684_v55 = vrot.slane %v682_v49, 1  ;;  %v690_v1 = vshll.u32 %v3599_v56, 16  ;;  %v861_v4 = vshrl.u32 %v3598_v46, 16  ;;  %v3601_v9 = vld [vmem:[%s3806_s10 + $0x18] sm:$0xff]   ;;  %v3602_v10 = vld [vmem:[%s3806_s10 + $0x44] sm:$0xff]  }
  0x2e   : > { %v855_v58 = vor.u32 %v854_v53, %v850_v52  ;;  %v859_v59 = vrot.slane %v857_v54, 1  ;;  %v865_v5 = vshll.u32 %v3600_v60, 16  ;;  %v694_v14 = vshrl.u32 %v3599_v56, 16  ;;  %v3603_v22 = vld [vmem:[%s3806_s10 + $0x20] sm:$0x1f]   ;;  %v3605_v43 = vld [vmem:[%s3806_s10 + $0x58] sm:$0xff]  }
  0x2f   : > { %v680_v57 = vor.u32 %v679_v51, %v675_v50  ;;  %v688_v7 = vor.u32 %v686_v0, %v684_v55  ;;  %v692_v8 = vrot.slane %v690_v1, 1  ;;  %v698_v15 = vshll.u32 %v3601_v9, 16  ;;  %v3604_v24 = vld [vmem:[%s3806_s10 + $0x4c] sm:$0x1f]   ;;  %v3610_v51 = vld [vmem:[%s3806_s10 + $0x94] sm:$0xff]   ;;  %v3612_v53 = vld [vmem:[%s3806_s10 + $0x9c] sm:$0xff]  }
  0x30   : > { %3210 = vmatmul.mubr.msk.bf16.gmra.mrb[4].mxu0 %vm431_vm2, %v3587_v35  ;;  %3232 = vmatmul.mubr.msk.bf16.gmra.mrb[4].mxu1 %vm431_vm2, %v3588_v36  ;;  %v860_v2 = vsel %vm673_vm3, %v855_v58, %v859_v59  ;;  %v863_v11 = vor.u32 %v861_v4, %v859_v59  ;;  %v867_v12 = vrot.slane %v865_v5, 1  ;;  %v873_v16 = vshll.u32 %v3602_v10, 16  ;;  %v2967_v42 = vld [vmem:[%s4448_s1 + $0xc] sm:$0x3]  ;;  %v2988_v44 = vld [vmem:[%s4448_s1 + $0xe] sm:$0x3] }
  0x31   : > { %3213 = vmatprep.mubr.msk.bf16.mxu0 %vm3674_vm1, %v3673_v26  ;;  %3235 = vmatprep.mubr.msk.bf16.mxu1 %vm3674_vm1, %v3673_v26  ;;  %v685_v63 = vsel %vm673_vm3, %v680_v57, %v684_v55  ;;  %v693_v13 = vsel %vm673_vm3, %v688_v7, %v692_v8  ;;  %v869_v18 = vshrl.u32 %v3600_v60, 16  ;;  %v696_v19 = vor.u32 %v694_v14, %v692_v8  ;;  %v3608_v49 = vld [vmem:[%s3806_s10 + $0x8c] sm:$0xff]   ;;  %v3615_v54 = vld [vmem:[%s3806_s10 + $0x58] sm:$0xff]   ;;  %v3617_v55 = vld [vmem:[%s3806_s10 + $0x84] sm:$0xff]  }
  0x32   : > { %v868_v17 = vsel %vm673_vm3, %v863_v11, %v867_v12  ;;  %v700_v20 = vrot.slane %v698_v15, 1  ;;  %v875_v21 = vrot.slane %v873_v16, 1  ;;  %v702_v27 = vshrl.u32 %v3601_v9, 16  ;;  %v3609_v50 = vld [vmem:[%s3806_s10 + $0x68] sm:$0xff]   ;;  %v3611_v52 = vld [vmem:[%s3806_s10 + $0x70] sm:$0xff]   ;;  %v3616_v56 = vld [vmem:[%s3806_s10 + $0x60] sm:$0xff]  }
  0x33   : > { %v871_v23 = vor.u32 %v869_v18, %v867_v12  ;;  %v706_v28 = vshll.u32 %v3603_v22, 16  ;;  %v877_v30 = vshrl.u32 %v3602_v10, 16  ;;  %v881_v31 = vshll.u32 %v3604_v24, 16  ;;  %v3618_v58 = vld [vmem:[%s3806_s10 + $0x8c] sm:$0xff]   ;;  %v3613_v60 = vld [vmem:[%s3806_s10 + $0x78] ss:$0 sps:$4 sm:$0xff]  }
  0x34   : > { %v701_v25 = vsel %vm673_vm3, %v696_v19, %v700_v20  ;;  %v704_v32 = vor.u32 %v702_v27, %v700_v20  ;;  %v1347_v46 = vsel %vm447_vm0, %v2967_v42, 0  ;;  %v1522_v47 = vsel %vm447_vm0, %v2988_v44, 0  ;;  %v3614_v61 = vld [vmem:[%s3806_s10 + $0xa4] ss:$0 sps:$4 sm:$0xff]   ;;  %v3620_v9 = vld [vmem:[%s3806_s10 + $0x94] sm:$0xff]  }
  0x35   : > { %v876_v29 = vsel %vm673_vm3, %v871_v23, %v875_v21  ;;  %v708_v33 = vrot.slane %v706_v28, 1  ;;  %v879_v34 = vor.u32 %v877_v30, %v875_v21  ;;  %v883_v35 = vrot.slane %v881_v31, 1  ;;  %v2999_v10 = vld [vmem:[%s4448_s1 + $0x10] sm:$0x3]  ;;  %v3020_v11 = vld [vmem:[%s4448_s1 + $0x12] sm:$0x3] }
  0x36   : > { %v1295_v57 = vshll.u32 %v3615_v54, 16  ;;  %v1470_v59 = vshll.u32 %v3617_v55, 16  ;;  %v1293_v62 = vshrl.u32 %v3615_v54, 16  ;;  %v1300_v0 = vshll.u32 %v3616_v56, 16 }
  0x37   : > { %v709_v36 = vsel %vm673_vm3, %v704_v32, %v708_v33  ;;  %v1468_v1 = vshrl.u32 %v3617_v55, 16  ;;  %v1697_v16 = vsel %vm447_vm0, %v2999_v10, 0  ;;  %v1483_v18 = vshll.u32 %v3620_v9, 16 }
  0x38   : > { %3214 = vmatmul.mubr.msk.bf16.gmra.mrb[8].mxu0 %vm431_vm2, %v3589_v37  ;;  %3236 = vmatmul.mubr.msk.bf16.gmra.mrb[8].mxu1 %vm431_vm2, %v3590_v38  ;;  %v884_v37 = vsel %vm673_vm3, %v879_v34, %v883_v35  ;;  %v710_v38 = vshrl.u32 %v3603_v22, 16  ;;  %v1302_v5 = vrot.slane %v1300_v0, 1  ;;  %v1872_v19 = vsel %vm447_vm0, %v3020_v11, 0  ;;  %v3621_v22 = vld [vmem:[%s3806_s10 + $0x70] sm:$0xff]  }
  0x39   : > { %3217 = vmatprep.mubr.msk.bf16.mxu0 %vm3674_vm1, %v3673_v26  ;;  %3239 = vmatprep.mubr.msk.bf16.mxu1 %vm3674_vm1, %v3673_v26  ;;  %v1487_v31 = vshrl.u32 %v3620_v9, 16  ;;  %v4035_v9 = vld [vmem:[%s3806_s10 + $0x14] sm:$0xff]  }
  0x40   : > { %3218 = vmatmul.mubr.msk.bf16.gmra.mrb[12].mxu0 %vm431_vm2, %v3591_v39  ;;  %3240 = vmatmul.mubr.msk.bf16.gmra.mrb[12].mxu1 %vm431_vm2, %v3592_v40  ;;  %v885_v39 = vshrl.u32 %v3604_v24, 16  ;;  %v712_v40 = vor.u32 %v710_v38, %v708_v33  ;;  %v1485_v24 = vrot.slane %v1483_v18, 1  ;;  %v3624_v38 = vld [vmem:[%s3806_s10 + $0xa4] sm:$0x1f]  }
  0x41   : > { %3221 = vmatprep.mubr.msk.bf16.mxu0 %vm3674_vm1, %v3673_v26  ;;  %3243 = vmatprep.mubr.msk.bf16.mxu1 %vm3674_vm1, %v3673_v26  ;;  %v1499_v44 = vshll.u32 %v3624_v38, 16 }
  0x42   : > { %v887_v41 = vor.u32 %v885_v39, %v883_v35  ;;  %v3623_v35 = vld [vmem:[%s3806_s10 + $0x78] sm:$0x1f]  }
  0x48   : > { %3222 = vmatmul.mubr.msk.bf16.gmra.mrb[16].mxu0 %vm431_vm2, %v3593_v45  ;;  %3244 = vmatmul.mubr.msk.bf16.gmra.mrb[16].mxu1 %vm431_vm2, %v3594_v48  ;;  %v3606_v45 = vld [vmem:[%s3806_s10 + $0x84] sm:$0xff]  }
  0x49   : > { %3249 = vmatprep.mubr.msk.bf16.mxu0 %vm3674_vm1, %v3673_v26  ;;  %3271 = vmatprep.mubr.msk.bf16.mxu1 %vm3674_vm1, %v3673_v26  ;;  %v3607_v48 = vld [vmem:[%s3806_s10 + $0x60] sm:$0xff]  }
  0x50   : > { %3250 = vmatmul.mubr.msk.bf16.vlgmr.msra.gmra.mrb[20].mxu0 %vm431_vm2, %v685_v63  ;;  %3272 = vmatmul.mubr.msk.bf16.vlgmr.msra.gmra.mrb[20].mxu1 %vm431_vm2, %v860_v2  ;;  %v1297_v63 = vrot.slane %v1295_v57, 1  ;;  %v1472_v2 = vrot.slane %v1470_v59, 1  ;;  %v1328_v57 = vshrl.u32 %v3623_v35, 16  ;;  %v4021_v59 = vld [vmem:[%s3806_s10 + $0xc] sm:$0xff]  }
  0x51   : > { %3292 = vmatpush3.bf16.msra.mxu0 %v1038_v3  ;;  %3314 = vmatpush3.bf16.msra.mxu1 %v1172_v6  ;;  %v1475_v3 = vshll.u32 %v3618_v58, 16  ;;  %v3619_v6 = vld [vmem:[%s3806_s10 + $0x68] sm:$0xff]  }
  0x52   : > { %3253 = vmatprep.mubr.msk.bf16.mxu0 %vm3674_vm1, %v3673_v26  ;;  %3275 = vmatprep.mubr.msk.bf16.mxu1 %vm3674_vm1, %v3673_v26  ;;  %v1298_v4 = vor.u32 %v1297_v63, %v1293_v62  ;;  %v1473_v7 = vor.u32 %v1472_v2, %v1468_v1  ;;  %v1308_v14 = vshll.u32 %v3619_v6, 16  ;;  %v1312_v28 = vshrl.u32 %v3619_v6, 16 }
  0x53   : > { %3335 = vmatprep.subr.bf16.mxu0 %v3673_v26  ;;  %3357 = vmatprep.subr.bf16.mxu1 %v3673_v26  ;;  %v1477_v8 = vrot.slane %v1475_v3, 1  ;;  %v1650_v3 = vshll.u32 %v4021_v59, 16 }
  0x54   : > { %v1303_v12 = vsel %vm673_vm3, %v1298_v4, %v1302_v5  ;;  %v1310_v21 = vrot.slane %v1308_v14, 1  ;;  %v3039_v14 = vld [vmem:[%s4448_s1 + $0x16] sm:$0x3] }
  0x55   : > { %v1478_v15 = vsel %vm673_vm3, %v1473_v7, %v1477_v8 }
  0x56   : > { %v1314_v33 = vor.u32 %v1312_v28, %v1310_v21 }
  0x58   : > { %3254 = vmatmul.mubr.msk.bf16.gmra.mrb[24].mxu0 %vm431_vm2, %v693_v13  ;;  %3276 = vmatmul.mubr.msk.bf16.gmra.mrb[24].mxu1 %vm431_vm2, %v868_v17  ;;  %v1304_v13 = vshrl.u32 %v3616_v56, 16  ;;  %v1479_v17 = vshrl.u32 %v3618_v58, 16  ;;  %v1503_v58 = vshrl.u32 %v3624_v38, 16  ;;  %v4081_v38 = vld [vmem:[%s3806_s10 + $0x24] sm:$0x1f]  }
  0x59   : > { %3257 = vmatprep.mubr.msk.bf16.mxu0 %vm3674_vm1, %v3673_v26  ;;  %3279 = vmatprep.mubr.msk.bf16.mxu1 %vm3674_vm1, %v3673_v26 }
  0x5a   : > { %v1306_v20 = vor.u32 %v1304_v13, %v1302_v5  ;;  %v1481_v23 = vor.u32 %v1479_v17, %v1477_v8  ;;  %v1652_v8 = vrot.slane %v1650_v3, 1  ;;  %v3031_v13 = vld [vmem:[%s4448_s1 + $0x14] sm:$0x3]  ;;  %v1658_v17 = vshll.u32 %v4035_v9, 16 }
  0x5b   : > { %v1963_v3 = vrot.slane %v4021_v59, 1 }
  0x5c   : > { %v1311_v27 = vsel %vm673_vm3, %v1306_v20, %v1310_v21  ;;  %v1486_v30 = vsel %vm673_vm3, %v1481_v23, %v1485_v24 }
  0x60   : > { %3258 = vmatmul.mubr.msk.bf16.gmra.mrb[28].mxu0 %vm431_vm2, %v701_v25  ;;  %3280 = vmatmul.mubr.msk.bf16.gmra.mrb[28].mxu1 %vm431_vm2, %v876_v29  ;;  %v3622_v25 = vld [vmem:[%s3806_s10 + $0x9c] sm:$0xff]   ;;  %v1316_v29 = vshll.u32 %v3621_v22, 16 }
  0x61   : > { %3261 = vmatprep.mubr.msk.bf16.mxu0 %vm3674_vm1, %v3673_v26  ;;  %3283 = vmatprep.mubr.msk.bf16.mxu1 %vm3674_vm1, %v3673_v26  ;;  %v1491_v32 = vshll.u32 %v3622_v25, 16 }
  0x62   : > { %v1318_v34 = vrot.slane %v1316_v29, 1  ;;  %v4064_v29 = vld [vmem:[%s3806_s10 + $0x48] sm:$0xff]  }
  0x64   : > { %v1319_v39 = vsel %vm673_vm3, %v1314_v33, %v1318_v34 }
  0x68   : > { %3262 = vmatmul.mubr.msk.bf16.gmra.mrb[32].mxu0 %vm431_vm2, %v709_v36  ;;  %3284 = vmatmul.mubr.msk.bf16.gmra.mrb[32].mxu1 %vm431_vm2, %v884_v37  ;;  %v1489_v36 = vor.u32 %v1487_v31, %v1485_v24  ;;  %v1493_v37 = vrot.slane %v1491_v32, 1  ;;  %v1660_v24 = vrot.slane %v1658_v17, 1  ;;  %v1662_v31 = vshrl.u32 %v4035_v9, 16 }
  0x69   : > { %3265 = vmatprep.mubr.msk.bf16.mxu0 %vm3674_vm1, %v3673_v26  ;;  %3287 = vmatprep.mubr.msk.bf16.mxu1 %vm3674_vm1, %v3673_v26 }
  0x6a   : > { %v1494_v42 = vsel %vm673_vm3, %v1489_v36, %v1493_v37  ;;  %v1664_v36 = vor.u32 %v1662_v31, %v1660_v24 }
  0x70   : > { %3266 = vmatmul.mubr.msk.bf16.gmra.mrb[36].mxu0 %vm431_vm2, %v712_v40  ;;  %3288 = vmatmul.mubr.msk.bf16.gmra.mrb[36].mxu1 %vm431_vm2, %v887_v41  ;;  %v1320_v40 = vshrl.u32 %v3621_v22, 16  ;;  %v1324_v41 = vshll.u32 %v3623_v35, 16  ;;  %v2101_v22 = vsel %vm447_vm0, %v3039_v14, 0  ;;  %v1841_v35 = vshll.u32 %v4064_v29, 16 }
  0x71   : > { %3293 = vmatprep.mubr.msk.bf16.mxu0 %vm3674_vm1, %v3673_v26  ;;  %3315 = vmatprep.mubr.msk.bf16.mxu1 %vm3674_vm1, %v3673_v26 }
  0x78   : > { %3294 = vmatmul.mubr.msk.bf16.vlgmr.msra.gmra.mrb[40].mxu0 %vm431_vm2, %v3605_v43  ;;  %3316 = vmatmul.mubr.msk.bf16.vlgmr.msra.gmra.mrb[40].mxu1 %vm431_vm2, %v3606_v45  ;;  %v1495_v43 = vshrl.u32 %v3622_v25, 16  ;;  %v1322_v45 = vor.u32 %v1320_v40, %v1318_v34  ;;  %v4059_v25 = vld [vmem:[%s3806_s10 + $0x1c] sm:$0xff]   ;;  %v1843_v40 = vrot.slane %v1841_v35, 1 }
  0x79   : > { %3336 = vmatpush3.bf16.msra.mxu0 %v1347_v46  ;;  %3358 = vmatpush3.bf16.msra.mxu1 %v1522_v47  ;;  %v1326_v46 = vrot.slane %v1324_v41, 1  ;;  %v1666_v32 = vshll.u32 %v4059_v25, 16  ;;  %v4086_v41 = vld [vmem:[%s3806_s10 + $0x50] sm:$0x1f]  }
  0x7a   : > { %3297 = vmatprep.mubr.msk.bf16.mxu0 %vm3674_vm1, %v3673_v26  ;;  %3319 = vmatprep.mubr.msk.bf16.mxu1 %vm3674_vm1, %v3673_v26  ;;  %v1497_v47 = vor.u32 %v1495_v43, %v1493_v37  ;;  %v1670_v43 = vshrl.u32 %v4059_v25, 16 }
  0x7b   : > { %3379 = vmatprep.subr.bf16.mxu0 %v3673_v26  ;;  %3401 = vmatprep.subr.bf16.mxu1 %v3673_v26  ;;  %v1330_v63 = vor.u32 %v1328_v57, %v1326_v46  ;;  %v1668_v37 = vrot.slane %v1666_v32, 1  ;;  %v1853_v57 = vshrl.u32 %v4086_v41, 16  ;;  %v3067_v32 = vld [vmem:[%s3806_s10 + $0x88] sm:$0xf] }
  0x80   : > { %3298 = vmatmul.mubr.msk.bf16.gmra.mrb[44].mxu0 %vm431_vm2, %v3607_v48  ;;  %3320 = vmatmul.mubr.msk.bf16.gmra.mrb[44].mxu1 %vm431_vm2, %v3608_v49  ;;  %v1501_v48 = vrot.slane %v1499_v44, 1  ;;  %v1605_v49 = vld [vmem:[%s3806_s10 + $0x4] sm:$0xf]  ;;  %v1674_v44 = vshll.u32 %v4081_v38, 16 }
  0x81   : > { %3301 = vmatprep.mubr.msk.bf16.mxu0 %vm3674_vm1, %v3673_v26  ;;  %3323 = vmatprep.mubr.msk.bf16.mxu1 %vm3674_vm1, %v3673_v26 }
  0x82   : > { %v1502_v55 = vsel %vm673_vm3, %v1497_v47, %v1501_v48  ;;  %v1505_v0 = vor.u32 %v1503_v58, %v1501_v48  ;;  %v1849_v47 = vshll.u32 %v4086_v41, 16  ;;  %v1672_v48 = vor.u32 %v1670_v43, %v1668_v37  ;;  %v1955_v58 = vld [vmem:[%s3806_s10 + $0x4] sm:$0xe] }
  0x88   : > { %3302 = vmatmul.mubr.msk.bf16.gmra.mrb[48].mxu0 %vm431_vm2, %v3609_v50  ;;  %3324 = vmatmul.mubr.msk.bf16.gmra.mrb[48].mxu1 %vm431_vm2, %v3610_v51  ;;  %v4006_v50 = vld [vmem:[%s3806_s10 + $0x8] sm:$0xf]  ;;  %v3010_v51 = vld [vmem:[%s3806_s10 + $0x30] sm:$0xf] }
  0x89   : > { %3305 = vmatprep.mubr.msk.bf16.mxu0 %vm3674_vm1, %v3673_v26  ;;  %3327 = vmatprep.mubr.msk.bf16.mxu1 %vm3674_vm1, %v3673_v26  ;;  %v3000_v54 = vcombine.low %v1605_v49, %v4006_v50  ;;  %v1676_v49 = vrot.slane %v1674_v44, 1 }
  0x8b   : > { %v1643_v1 = vshrl.u32 %v3000_v54, 16 }
  0x90   : > { %3306 = vmatmul.mubr.msk.bf16.gmra.mrb[52].mxu0 %vm431_vm2, %v3611_v52  ;;  %3328 = vmatmul.mubr.msk.bf16.gmra.mrb[52].mxu1 %vm431_vm2, %v3612_v53  ;;  %v4010_v52 = vld [vmem:[%s3806_s10 + $0x34] sm:$0xf]  ;;  %v1327_v53 = vsel %vm673_vm3, %v1322_v45, %v1326_v46  ;;  %v1845_v46 = vshrl.u32 %v4064_v29, 16 }
  0x91   : > { %3309 = vmatprep.mubr.msk.bf16.mxu0 %vm3674_vm1, %v3673_v26  ;;  %3331 = vmatprep.mubr.msk.bf16.mxu1 %vm3674_vm1, %v3673_v26  ;;  %v3021_v56 = vcombine.low %v3010_v51, %v4010_v52 }
  0x92   : > { %v1847_v51 = vor.u32 %v1845_v46, %v1843_v40 }
  0x93   : > { %v1820_v62 = vshll.u32 %v3021_v56, 16  ;;  %v1818_v4 = vshrl.u32 %v3021_v56, 16  ;;  %v1678_v56 = vshrl.u32 %v4081_v38, 16 }
  0x95   : > { %v1822_v5 = vrot.slane %v1820_v62, 1  ;;  %v1680_v62 = vor.u32 %v1678_v56, %v1676_v49 }
  0x97   : > { %v1823_v10 = vor.u32 %v1822_v5, %v1818_v4 }
  0x98   : > { %3310 = vmatmul.mubr.msk.bf16.gmra.mrb[56].mxu0 %vm431_vm2, %v3613_v60  ;;  %3332 = vmatmul.mubr.msk.bf16.gmra.mrb[56].mxu1 %vm431_vm2, %v3614_v61  ;;  %v1645_v60 = vshll.u32 %v3000_v54, 16  ;;  %v4026_v61 = vld [vmem:[%s3806_s10 + $0x38] sm:$0xff]   ;;  %v1677_v54 = vsel %vm673_vm3, %v1672_v48, %v1676_v49  ;;  %v4192_v49 = vld [vmem:[%s3806_s10 + $0x90] sm:$0xff]  }
  0x99   : > { %3337 = vmatprep.mubr.msk.bf16.mxu0 %vm3674_vm1, %v3673_v26  ;;  %3359 = vmatprep.mubr.msk.bf16.mxu1 %vm3674_vm1, %v3673_v26  ;;  %v1825_v6 = vshll.u32 %v4026_v61, 16  ;;  %v1829_v20 = vshrl.u32 %v4026_v61, 16  ;;  %v2077_v5 = vrot.slane %v4026_v61, 1  ;;  %v1965_v61 = vrot.slane %v4035_v9, 1 }
  0x9a   : > { %v1647_v2 = vrot.slane %v1645_v60, 1  ;;  %v3038_v60 = vld [vmem:[%s3806_s10 + $0x30] sm:$0xe]  ;;  %v1967_v9 = vrot.slane %v4059_v25, 1 }
  0x9b   : > { %v1827_v11 = vrot.slane %v1825_v6, 1 }
  0x9c   : > { %v1648_v7 = vor.u32 %v1647_v2, %v1643_v1  ;;  %v3040_v1 = vcombine.low %v3038_v60, %v4010_v52  ;;  %v3077_v52 = vld [vmem:[%s4448_s1 + $0x1a] sm:$0x3] }
  0x9d   : > { %v1828_v18 = vsel %vm673_vm3, %v1823_v10, %v1827_v11 }
  0x9e   : > { %v2076_v4 = vrot.slane %v3040_v1, 1 }
  0xa0   : > { %3338 = vmatmul.mubr.msk.bf16.vlgmr.msra.gmra.mrb[60].mxu0 %vm431_vm2, %v1303_v12  ;;  %3360 = vmatmul.mubr.msk.bf16.vlgmr.msra.gmra.mrb[60].mxu1 %vm431_vm2, %v1478_v15  ;;  %v4040_v12 = vld [vmem:[%s3806_s10 + $0x40] sm:$0xff]   ;;  %v1653_v15 = vsel %vm673_vm3, %v1648_v7, %v1652_v8  ;;  %v2078_v7 = vsel %vm1961_vm4, %v2076_v4, %v2077_v5  ;;  %v2404_v4 = vshll.u32 %v4192_v49, 16 }
  0xa1   : > { %3380 = vmatpush3.bf16.msra.mxu0 %v1697_v16  ;;  %3402 = vmatpush3.bf16.msra.mxu1 %v1872_v19  ;;  %v1654_v16 = vshrl.u32 %v4021_v59, 16  ;;  %v1987_v19 = vsel %vm447_vm0, %v3031_v13, 0  ;;  %v1833_v21 = vshll.u32 %v4040_v12, 16  ;;  %v1837_v34 = vshrl.u32 %v4040_v12, 16 }
  0xa2   : > { %3341 = vmatprep.mubr.msk.bf16.mxu0 %vm3674_vm1, %v3673_v26  ;;  %3363 = vmatprep.mubr.msk.bf16.mxu1 %vm3674_vm1, %v3673_v26  ;;  %v2079_v10 = vrot.slane %v4040_v12, 1  ;;  %v2081_v12 = vrot.slane %v4064_v29, 1  ;;  %v3046_v29 = vld [vmem:[%s3806_s10 + $0x5c] sm:$0xf] }
  0xa3   : > { %3423 = vmatprep.subr.bf16.mxu0 %v3673_v26  ;;  %3445 = vmatprep.subr.bf16.mxu1 %v3673_v26  ;;  %v1656_v23 = vor.u32 %v1654_v16, %v1652_v8  ;;  %v1835_v28 = vrot.slane %v1833_v21, 1  ;;  %v2451_v8 = vsel %vm447_vm0, %v3077_v52, 0  ;;  %v4202_v52 = vld [vmem:[%s3806_s10 + $0x6c] sm:$0xff]  }
  0xa4   : > { %v2080_v13 = vsel %vm1961_vm4, %v2077_v5, %v2079_v10 }
  0xa8   : > { %3342 = vmatmul.mubr.msk.bf16.gmra.mrb[64].mxu0 %vm431_vm2, %v1311_v27  ;;  %3364 = vmatmul.mubr.msk.bf16.gmra.mrb[64].mxu1 %vm431_vm2, %v1486_v30  ;;  %v1831_v27 = vor.u32 %v1829_v20, %v1827_v11  ;;  %v1661_v30 = vsel %vm673_vm3, %v1656_v23, %v1660_v24  ;;  %v1966_v11 = vsel %vm1961_vm4, %v1963_v3, %v1965_v61 }
  0xa9   : > { %3345 = vmatprep.mubr.msk.bf16.mxu0 %vm3674_vm1, %v3673_v26  ;;  %3367 = vmatprep.mubr.msk.bf16.mxu1 %vm3674_vm1, %v3673_v26  ;;  %v1968_v20 = vsel %vm1961_vm4, %v1965_v61, %v1967_v9  ;;  %v2082_v23 = vsel %vm1961_vm4, %v2079_v10, %v2081_v12  ;;  %v4210_v61 = vld [vmem:[%s3806_s10 + $0x98] sm:$0xff]  }
  0xaa   : > { %v1836_v33 = vsel %vm673_vm3, %v1831_v27, %v1835_v28  ;;  %v1969_v27 = vrot.slane %v4081_v38, 1 }
  0xb0   : > { %3346 = vmatmul.mubr.msk.bf16.gmra.mrb[68].mxu0 %vm431_vm2, %v1319_v39  ;;  %3368 = vmatmul.mubr.msk.bf16.gmra.mrb[68].mxu1 %vm431_vm2, %v1494_v42  ;;  %v1839_v39 = vor.u32 %v1837_v34, %v1835_v28  ;;  %v1669_v42 = vsel %vm673_vm3, %v1664_v36, %v1668_v37  ;;  %v2083_v28 = vrot.slane %v4086_v41, 1 }
  0xb1   : > { %3349 = vmatprep.mubr.msk.bf16.mxu0 %vm3674_vm1, %v3673_v26  ;;  %3371 = vmatprep.mubr.msk.bf16.mxu1 %vm3674_vm1, %v3673_v26 }
  0xb2   : > { %v1844_v45 = vsel %vm673_vm3, %v1839_v39, %v1843_v40  ;;  %v1970_v39 = vsel %vm1961_vm4, %v1967_v9, %v1969_v27  ;;  %v2084_v43 = vsel %vm1961_vm4, %v2081_v12, %v2083_v28  ;;  %v3097_v12 = vld [vmem:[%s4448_s1 + $0x1e] sm:$0x3] }
  0xb8   : > { %3350 = vmatmul.mubr.msk.bf16.gmra.mrb[72].mxu0 %vm431_vm2, %v1327_v53  ;;  %3372 = vmatmul.mubr.msk.bf16.gmra.mrb[72].mxu1 %vm431_vm2, %v1502_v55  ;;  %v1851_v53 = vrot.slane %v1849_v47, 1  ;;  %v4187_v47 = vld [vmem:[%s3806_s10 + $0x64] sm:$0xff]  }
  0xb9   : > { %3353 = vmatprep.mubr.msk.bf16.mxu0 %vm3674_vm1, %v3673_v26  ;;  %3375 = vmatprep.mubr.msk.bf16.mxu1 %vm3674_vm1, %v3673_v26 }
  0xba   : > { %v1852_v55 = vsel %vm673_vm3, %v1847_v51, %v1851_v53 }
  0xc0   : > { %3354 = vmatmul.mubr.msk.bf16.gmra.mrb[76].mxu0 %vm431_vm2, %v1330_v63  ;;  %3376 = vmatmul.mubr.msk.bf16.gmra.mrb[76].mxu1 %vm431_vm2, %v1505_v0  ;;  %v1855_v63 = vor.u32 %v1853_v57, %v1851_v53  ;;  %v3032_v0 = vcombine.low %v1955_v58, %v4006_v50  ;;  %v3056_v50 = vld [vmem:[%s4448_s1 + $0x18] sm:$0x3] }
  0xc1   : > { %3381 = vmatprep.mubr.msk.bf16.mxu0 %vm3674_vm1, %v3673_v26  ;;  %3403 = vmatprep.mubr.msk.bf16.mxu1 %vm3674_vm1, %v3673_v26  ;;  %v2276_v59 = vsel %vm447_vm0, %v3056_v50, 0 }
  0xc2   : > { %v1962_v2 = vrot.slane %v3032_v0, 1 }
  0xc4   : > { %v1964_v6 = vsel %vm1961_vm4, %v1962_v2, %v1963_v3 }
  0xc8   : > { %3382 = vmatmul.mubr.msk.bf16.vlgmr.msra.gmra.mrb[80].mxu0 %vm431_vm2, %v1653_v15  ;;  %3404 = vmatmul.mubr.msk.bf16.vlgmr.msra.gmra.mrb[80].mxu1 %vm431_vm2, %v1828_v18 }
  0xc9   : > { %3424 = vmatpush3.bf16.msra.mxu0 %v1987_v19  ;;  %3446 = vmatpush3.bf16.msra.mxu1 %v2101_v22 }
  0xca   : > { %3385 = vmatprep.mubr.msk.bf16.mxu0 %vm3674_vm1, %v3673_v26  ;;  %3407 = vmatprep.mubr.msk.bf16.mxu1 %vm3674_vm1, %v3673_v26 }
  0xcb   : > { %3467 = vmatprep.subr.bf16.mxu0 %v3673_v26  ;;  %3489 = vmatprep.subr.bf16.mxu1 %v3673_v26 }
  0xd0   : > { %3386 = vmatmul.mubr.msk.bf16.gmra.mrb[84].mxu0 %vm431_vm2, %v1661_v30  ;;  %3408 = vmatmul.mubr.msk.bf16.gmra.mrb[84].mxu1 %vm431_vm2, %v1836_v33  ;;  %v4168_v30 = vld [vmem:[%s3806_s10 + $0x60] sm:$0xf]  ;;  %v4172_v33 = vld [vmem:[%s3806_s10 + $0x8c] sm:$0xf] }
  0xd1   : > { %3389 = vmatprep.mubr.msk.bf16.mxu0 %vm3674_vm1, %v3673_v26  ;;  %3411 = vmatprep.mubr.msk.bf16.mxu1 %vm3674_vm1, %v3673_v26  ;;  %v3057_v40 = vcombine.low %v3046_v29, %v4168_v30  ;;  %v3078_v44 = vcombine.low %v3067_v32, %v4172_v33  ;;  %v2679_v32 = vsel %vm447_vm0, %v3097_v12, 0 }
  0xd3   : > { %v2224_v48 = vshll.u32 %v3057_v40, 16  ;;  %v2399_v51 = vshll.u32 %v3078_v44, 16  ;;  %v2222_v60 = vshrl.u32 %v3057_v40, 16  ;;  %v2397_v2 = vshrl.u32 %v3078_v44, 16 }
  0xd5   : > { %v2401_v3 = vrot.slane %v2399_v51, 1 }
  0xd8   : > { %3390 = vmatmul.mubr.msk.bf16.gmra.mrb[88].mxu0 %vm431_vm2, %v1669_v42  ;;  %3412 = vmatmul.mubr.msk.bf16.gmra.mrb[88].mxu1 %vm431_vm2, %v1844_v45 }
  0xd9   : > { %3393 = vmatprep.mubr.msk.bf16.mxu0 %vm3674_vm1, %v3673_v26  ;;  %3415 = vmatprep.mubr.msk.bf16.mxu1 %vm3674_vm1, %v3673_v26 }
  0xe0   : > { %3394 = vmatmul.mubr.msk.bf16.gmra.mrb[92].mxu0 %vm431_vm2, %v1677_v54  ;;  %3416 = vmatmul.mubr.msk.bf16.gmra.mrb[92].mxu1 %vm431_vm2, %v1852_v55 }
  0xe1   : > { %3397 = vmatprep.mubr.msk.bf16.mxu0 %vm3674_vm1, %v3673_v26  ;;  %3419 = vmatprep.mubr.msk.bf16.mxu1 %vm3674_vm1, %v3673_v26 }
  0xe8   : > { %3398 = vmatmul.mubr.msk.bf16.gmra.mrb[96].mxu0 %vm431_vm2, %v1680_v62  ;;  %3420 = vmatmul.mubr.msk.bf16.gmra.mrb[96].mxu1 %vm431_vm2, %v1855_v63  ;;  %v2226_v62 = vrot.slane %v2224_v48, 1  ;;  %v2229_v63 = vshll.u32 %v4187_v47, 16 }
  0xe9   : > { %3425 = vmatprep.mubr.msk.bf16.mxu0 %vm3674_vm1, %v3673_v26  ;;  %3447 = vmatprep.mubr.msk.bf16.mxu1 %vm3674_vm1, %v3673_v26 }
  0xf0   : > { %3426 = vmatmul.mubr.msk.bf16.vlgmr.msra.gmra.mrb[100].mxu0 %vm431_vm2, %v1964_v6  ;;  %3448 = vmatmul.mubr.msk.bf16.vlgmr.msra.gmra.mrb[100].mxu1 %vm431_vm2, %v2078_v7  ;;  %v2227_v6 = vor.u32 %v2226_v62, %v2222_v60  ;;  %v2231_v7 = vrot.slane %v2229_v63, 1 }
  0xf1   : > { %3468 = vmatpush3.bf16.msra.mxu0 %v2276_v59  ;;  %3490 = vmatpush3.bf16.msra.mxu1 %v2451_v8  ;;  %v2402_v59 = vor.u32 %v2401_v3, %v2397_v2  ;;  %v2406_v8 = vrot.slane %v2404_v4, 1  ;;  %v4255_v4 = vld [vmem:[%s3806_s10 + $0x7c] sm:$0x1f]  }
  0xf2   : > { %3429 = vmatprep.mubr.msk.bf16.mxu0 %vm3674_vm1, %v3673_v26  ;;  %3451 = vmatprep.mubr.msk.bf16.mxu1 %vm3674_vm1, %v3673_v26 }
  0xf3   : > { %3511 = vmatprep.subr.bf16.mxu0 %v3673_v26  ;;  %3533 = vmatprep.subr.bf16.mxu1 %v3673_v26 }
  0xf8   : > { %3430 = vmatmul.mubr.msk.bf16.gmra.mrb[104].mxu0 %vm431_vm2, %v1966_v11  ;;  %3452 = vmatmul.mubr.msk.bf16.gmra.mrb[104].mxu1 %vm431_vm2, %v2080_v13  ;;  %v3089_v11 = vld [vmem:[%s4448_s1 + $0x1c] sm:$0x3] }
  0xf9   : > { %3433 = vmatprep.mubr.msk.bf16.mxu0 %vm3674_vm1, %v3673_v26  ;;  %3455 = vmatprep.mubr.msk.bf16.mxu1 %vm3674_vm1, %v3673_v26 }
  0xfb   : > { %v485_v14 = vpop.f32.mrb[0].mxu0  ;;  %v598_v15 = vpop.f32.mrb[0].mxu1 }
  0xfc   : > { %v3207_v16 = vpop.f32.mrb[1].mxu0  ;;  %v4152_v17 = vadd.f32 %v598_v15, %v485_v14  ;;  %v3229_v18 = vpop.f32.mrb[1].mxu1  ;;  %v2233_v14 = vshrl.u32 %v4187_v47, 16  ;;  %v2237_v15 = vshll.u32 %v4202_v52, 16 }
  0xfd   : > { %v488_v19 = vpop.f32.mrb[2].mxu0  ;;  %v601_v21 = vpop.f32.mrb[2].mxu1 }
  0xfe   : > { %v3208_v22 = vpop.f32.mrb[3].mxu0  ;;  %v4156_v24 = vadd.f32 %v601_v21, %v488_v19  ;;  %v3230_v25 = vpop.f32.mrb[3].mxu1 }
  0xff   : > { %v2565_v25 = vsel %vm447_vm0, %v3089_v11, 0 }
 0x100   : > { %3434 = vmatmul.mubr.msk.bf16.gmra.mrb[108].mxu0 %vm431_vm2, %v1968_v20  ;;  %3456 = vmatmul.mubr.msk.bf16.gmra.mrb[108].mxu1 %vm431_vm2, %v2082_v23  ;;  %v2232_v20 = vsel %vm673_vm3, %v2227_v6, %v2231_v7  ;;  %v2407_v23 = vsel %vm673_vm3, %v2402_v59, %v2406_v8 }
 0x101   : > { %3437 = vmatprep.mubr.msk.bf16.mxu0 %vm3674_vm1, %v3673_v26  ;;  %3459 = vmatprep.mubr.msk.bf16.mxu1 %vm3674_vm1, %v3673_v26 }
 0x103   : > { %v493_v31 = vpop.f32.mrb[4].mxu0  ;;  %v606_v34 = vpop.f32.mrb[4].mxu1 }
 0x104   : > { %v3211_v35 = vpop.f32.mrb[5].mxu0  ;;  %v4174_v36 = vadd.f32 %v606_v34, %v493_v31  ;;  %v3233_v37 = vpop.f32.mrb[5].mxu1  ;;  %v2235_v34 = vor.u32 %v2233_v14, %v2231_v7  ;;  %v2253_v14 = vshll.u32 %v4255_v4, 16 }
 0x105   : > { %v496_v38 = vpop.f32.mrb[6].mxu0  ;;  %v609_v41 = vpop.f32.mrb[6].mxu1  ;;  %v2239_v35 = vrot.slane %v2237_v15, 1  ;;  %v4233_v37 = vld [vmem:[%s3806_s10 + $0x74] sm:$0xff]  }
 0x106   : > { %v3212_v42 = vpop.f32.mrb[7].mxu0  ;;  %v4180_v45 = vadd.f32 %v609_v41, %v496_v38  ;;  %v3234_v46 = vpop.f32.mrb[7].mxu1  ;;  %v4236_v38 = vld [vmem:[%s3806_s10 + $0xa0] sm:$0xff]   ;;  %v2249_v12 = vshrl.u32 %v4233_v37, 16 }
 0x107   : > { %v2240_v44 = vsel %vm673_vm3, %v2235_v34, %v2239_v35  ;;  %v2241_v46 = vshrl.u32 %v4202_v52, 16 }
 0x108   : > { %3438 = vmatmul.mubr.msk.bf16.gmra.mrb[112].mxu0 %vm431_vm2, %v1970_v39  ;;  %3460 = vmatmul.mubr.msk.bf16.gmra.mrb[112].mxu1 %vm431_vm2, %v2084_v43 }
 0x109   : > { %3441 = vmatprep.mubr.msk.bf16.mxu0 %vm3674_vm1, %v3673_v26  ;;  %3463 = vmatprep.mubr.msk.bf16.mxu1 %vm3674_vm1, %v3673_v26 }
 0x10b   : > { %v501_v53 = vpop.f32.mrb[8].mxu0  ;;  %v614_v54 = vpop.f32.mrb[8].mxu1 }
 0x10c   : > { %v3215_v55 = vpop.f32.mrb[9].mxu0  ;;  %v4194_v56 = vadd.f32 %v614_v54, %v501_v53  ;;  %v3237_v57 = vpop.f32.mrb[9].mxu1  ;;  %v2245_v54 = vshll.u32 %v4233_v37, 16 }
 0x10d   : > { %v504_v58 = vpop.f32.mrb[10].mxu0  ;;  %v617_v0 = vpop.f32.mrb[10].mxu1  ;;  %v2416_v55 = vshrl.u32 %v4210_v61, 16  ;;  %v2420_v57 = vshll.u32 %v4236_v38, 16 }
 0x10e   : > { %v3216_v1 = vpop.f32.mrb[11].mxu0  ;;  %v4198_v5 = vadd.f32 %v617_v0, %v504_v58  ;;  %v3238_v50 = vpop.f32.mrb[11].mxu1  ;;  %v2243_v0 = vor.u32 %v2241_v46, %v2239_v35 }
 0x10f   : > { %v2247_v1 = vrot.slane %v2245_v54, 1  ;;  %v2422_v3 = vrot.slane %v2420_v57, 1  ;;  %v4260_v50 = vld [vmem:[%s3806_s10 + $0xa8] sm:$0x1f]  }
 0x110   : > { %3442 = vmatmul.mubr.msk.bf16.gmra.mrb[116].mxu0 %vm431_vm2, %v1969_v27  ;;  %3464 = vmatmul.mubr.msk.bf16.gmra.mrb[116].mxu1 %vm431_vm2, %v2083_v28  ;;  %v2408_v27 = vshrl.u32 %v4192_v49, 16  ;;  %v2412_v28 = vshll.u32 %v4210_v61, 16 }
 0x111   : > { %3469 = vmatprep.mubr.msk.bf16.mxu0 %vm3674_vm1, %v3673_v26  ;;  %3491 = vmatprep.mubr.msk.bf16.mxu1 %vm3674_vm1, %v3673_v26 }
 0x112   : > { %v2410_v39 = vor.u32 %v2408_v27, %v2406_v8  ;;  %v2414_v40 = vrot.slane %v2412_v28, 1  ;;  %v2255_v27 = vrot.slane %v2253_v14, 1 }
 0x113   : > { %v509_v10 = vpop.f32.mrb[12].mxu0  ;;  %v622_v13 = vpop.f32.mrb[12].mxu1 }
 0x114   : > { %v3219_v9 = vpop.f32.mrb[13].mxu0  ;;  %v4220_v16 = vadd.f32 %v622_v13, %v509_v10  ;;  %v3241_v18 = vpop.f32.mrb[13].mxu1  ;;  %v2415_v62 = vsel %vm673_vm3, %v2410_v39, %v2414_v40  ;;  %v2418_v2 = vor.u32 %v2416_v55, %v2414_v40  ;;  %v2248_v13 = vsel %vm673_vm3, %v2243_v0, %v2247_v1 }
 0x115   : > { %v512_v19 = vpop.f32.mrb[14].mxu0  ;;  %v625_v21 = vpop.f32.mrb[14].mxu1  ;;  %v2432_v55 = vshrl.u32 %v4260_v50, 16 }
 0x116   : > { %v3220_v22 = vpop.f32.mrb[15].mxu0  ;;  %v4227_v29 = vadd.f32 %v625_v21, %v512_v19  ;;  %v3242_v31 = vpop.f32.mrb[15].mxu1  ;;  %v2423_v9 = vsel %vm673_vm3, %v2418_v2, %v2422_v3  ;;  %v2428_v21 = vshll.u32 %v4260_v50, 16 }
 0x118   : > { %3470 = vmatmul.mubr.msk.bf16.vlgmr.msra.gmra.mrb[120].mxu0 %vm431_vm2, %v2232_v20  ;;  %3492 = vmatmul.mubr.msk.bf16.vlgmr.msra.gmra.mrb[120].mxu1 %vm431_vm2, %v2407_v23  ;;  %v2430_v28 = vrot.slane %v2428_v21, 1 }
 0x119   : > { %3512 = vmatpush3.bf16.msra.mxu0 %v2565_v25  ;;  %3534 = vmatpush3.bf16.msra.mxu1 %v2679_v32  ;;  %v2251_v25 = vor.u32 %v2249_v12, %v2247_v1  ;;  %v2655_v12 = vrot.slane %v4192_v49, 1  ;;  %v2543_v49 = vrot.slane %v4202_v52, 1 }
 0x11a   : > { %3473 = vmatprep.mubr.msk.bf16.mxu0 %vm3674_vm1, %v3673_v26  ;;  %3495 = vmatprep.mubr.msk.bf16.mxu1 %vm3674_vm1, %v3673_v26 }
 0x11b   : > { %v517_v41 = vpop.f32.mrb[16].mxu0  ;;  %v630_v42 = vpop.f32.mrb[16].mxu1 }
 0x11c   : > { %v3223_v43 = vpop.f32.mrb[17].mxu0  ;;  %v4244_v48 = vadd.f32 %v630_v42, %v517_v41  ;;  %v3245_v51 = vpop.f32.mrb[17].mxu1  ;;  %v2256_v41 = vsel %vm673_vm3, %v2251_v25, %v2255_v27 }
 0x11d   : > { %v520_v53 = vpop.f32.mrb[18].mxu0  ;;  %v633_v58 = vpop.f32.mrb[18].mxu1 }
 0x11e   : > { %v3224_v60 = vpop.f32.mrb[19].mxu0  ;;  %v3246_v63 = vpop.f32.mrb[19].mxu1  ;;  %v3096_v58 = vld [vmem:[%s3806_s10 + $0x88] sm:$0xe] }
 0x120   : > { %3474 = vmatmul.mubr.msk.bf16.gmra.mrb[124].mxu0 %vm431_vm2, %v2240_v44  ;;  %3496 = vmatmul.mubr.msk.bf16.gmra.mrb[124].mxu1 %vm431_vm2, %v2415_v62 }
 0x121   : > { %3477 = vmatprep.mubr.msk.bf16.mxu0 %vm3674_vm1, %v3673_v26  ;;  %3499 = vmatprep.mubr.msk.bf16.mxu1 %vm3674_vm1, %v3673_v26 }
 0x123   : > { %v765_v6 = vpop.f32.mrb[20].mxu0  ;;  %v940_v59 = vpop.f32.mrb[20].mxu1 }
 0x124   : > { %v803_v7 = vadd.f32 %v765_v6, %v4152_v17  ;;  %v3251_v8 = vpop.f32.mrb[21].mxu0  ;;  %v3273_v10 = vpop.f32.mrb[21].mxu1  ;;  %v2424_v17 = vshrl.u32 %v4236_v38, 16 }
 0x125   : > { %v768_v11 = vpop.f32.mrb[22].mxu0  ;;  %v943_v19 = vpop.f32.mrb[22].mxu1 }
 0x126   : > { %v4267_v15 = vadd.f32 %v940_v59, %v803_v7  ;;  %v804_v18 = vadd.f32 %v768_v11, %v4156_v24  ;;  %v3252_v20 = vpop.f32.mrb[23].mxu0  ;;  %v3274_v22 = vpop.f32.mrb[23].mxu1  ;;  %v2426_v24 = vor.u32 %v2424_v17, %v2422_v3  ;;  %v2434_v3 = vor.u32 %v2432_v55, %v2430_v28 }
 0x127   : > { %v3098_v11 = vcombine.low %v3096_v58, %v4172_v33 }
 0x128   : > { %v4272_v23 = vadd.f32 %v943_v19, %v804_v18  ;;  %3478 = vmatmul.mubr.msk.bf16.gmra.mrb[128].mxu0 %vm431_vm2, %v2248_v13  ;;  %3500 = vmatmul.mubr.msk.bf16.gmra.mrb[128].mxu1 %vm431_vm2, %v2423_v9  ;;  %v2431_v51 = vsel %vm673_vm3, %v2426_v24, %v2430_v28 }
 0x129   : > { %3481 = vmatprep.mubr.msk.bf16.mxu0 %vm3674_vm1, %v3673_v26  ;;  %3503 = vmatprep.mubr.msk.bf16.mxu1 %vm3674_vm1, %v3673_v26 }
 0x12b   : > { %v773_v31 = vpop.f32.mrb[24].mxu0  ;;  %v948_v34 = vpop.f32.mrb[24].mxu1 }
 0x12c   : > { %v805_v32 = vadd.f32 %v773_v31, %v4174_v36  ;;  %v3255_v35 = vpop.f32.mrb[25].mxu0  ;;  %v3277_v39 = vpop.f32.mrb[25].mxu1  ;;  %v2257_v36 = vshrl.u32 %v4255_v4, 16 }
 0x12d   : > { %v776_v40 = vpop.f32.mrb[26].mxu0  ;;  %v951_v44 = vpop.f32.mrb[26].mxu1 }
 0x12e   : > { %v4282_v42 = vadd.f32 %v948_v34, %v805_v32  ;;  %v806_v43 = vadd.f32 %v776_v40, %v4180_v45  ;;  %v3256_v46 = vpop.f32.mrb[27].mxu0  ;;  %v3278_v53 = vpop.f32.mrb[27].mxu1  ;;  %v3088_v45 = vld [vmem:[%s3806_s10 + $0x5c] sm:$0xe]  ;;  %v2259_v0 = vor.u32 %v2257_v36, %v2255_v27  ;;  %s3558_s10 = smul.u32 72, %s4455_s15 }
 0x12f   : > { %v3090_v6 = vcombine.low %v3088_v45, %v4168_v30  ;;  %v2541_v30 = vrot.slane %v4187_v47, 1 }
 0x130   : > { %v4286_v54 = vadd.f32 %v951_v44, %v806_v43  ;;  %3482 = vmatmul.mubr.msk.bf16.gmra.mrb[132].mxu0 %vm431_vm2, %v2256_v41  ;;  %3504 = vmatmul.mubr.msk.bf16.gmra.mrb[132].mxu1 %vm431_vm2, %v2431_v51  ;;  %s4402_s14 = scalar_lea.vmem %s4450_s3, %s3558_s10 }
 0x131   : > { %3485 = vmatprep.mubr.msk.bf16.mxu0 %vm3674_vm1, %v3673_v26  ;;  %3507 = vmatprep.mubr.msk.bf16.mxu1 %vm3674_vm1, %v3673_v26  ;;  %v2544_v41 = vsel %vm1961_vm4, %v2541_v30, %v2543_v49 }
 0x133   : > { %v781_v57 = vpop.f32.mrb[28].mxu0  ;;  %v956_v62 = vpop.f32.mrb[28].mxu1 }
 0x134   : > { %v807_v60 = vadd.f32 %v781_v57, %v4194_v56  ;;  %v3259_v63 = vpop.f32.mrb[29].mxu0  ;;  %v3281_v1 = vpop.f32.mrb[29].mxu1  ;;  %v2540_v56 = vrot.slane %v3090_v6, 1 }
 0x135   : > { %v784_v2 = vpop.f32.mrb[30].mxu0  ;;  %v959_v8 = vpop.f32.mrb[30].mxu1 }
 0x136   : > { %v4300_v7 = vadd.f32 %v956_v62, %v807_v60  ;;  %v808_v59 = vadd.f32 %v784_v2, %v4198_v5  ;;  %v3260_v10 = vpop.f32.mrb[31].mxu0  ;;  %v3282_v13 = vpop.f32.mrb[31].mxu1  ;;  %v2654_v5 = vrot.slane %v3098_v11, 1  ;;  %v2542_v21 = vsel %vm1961_vm4, %v2540_v56, %v2541_v30 }
 0x138   : > { %v4304_v9 = vadd.f32 %v959_v8, %v808_v59  ;;  %3486 = vmatmul.mubr.msk.bf16.gmra.mrb[136].mxu0 %vm431_vm2, %v2259_v0  ;;  %3508 = vmatmul.mubr.msk.bf16.gmra.mrb[136].mxu1 %vm431_vm2, %v2434_v3  ;;  %v2656_v24 = vsel %vm1961_vm4, %v2654_v5, %v2655_v12 }
 0x139   : > { %3513 = vmatprep.mubr.msk.bf16.mxu0 %vm3674_vm1, %v3673_v26  ;;  %3535 = vmatprep.mubr.msk.bf16.mxu1 %vm3674_vm1, %v3673_v26 }
 0x13b   : > { %v789_v33 = vpop.f32.mrb[32].mxu0  ;;  %v964_v18 = vpop.f32.mrb[32].mxu1 }
 0x13c   : > { %v809_v14 = vadd.f32 %v789_v33, %v4220_v16  ;;  %v3263_v19 = vpop.f32.mrb[33].mxu0  ;;  %v3285_v20 = vpop.f32.mrb[33].mxu1  ;;  %v2657_v16 = vrot.slane %v4210_v61, 1  ;;  %v2545_v61 = vrot.slane %v4233_v37, 1 }
 0x13d   : > { %v792_v17 = vpop.f32.mrb[34].mxu0  ;;  %v967_v47 = vpop.f32.mrb[34].mxu1 }
 0x13e   : > { %v4316_v22 = vadd.f32 %v964_v18, %v809_v14  ;;  %v810_v25 = vadd.f32 %v792_v17, %v4227_v29  ;;  %v3264_v27 = vpop.f32.mrb[35].mxu0  ;;  %v3286_v28 = vpop.f32.mrb[35].mxu1  ;;  %v2658_v52 = vsel %vm1961_vm4, %v2655_v12, %v2657_v16  ;;  %v2546_v60 = vsel %vm1961_vm4, %v2543_v49, %v2545_v61 }
 0x140   : > { %v4320_v31 = vadd.f32 %v967_v47, %v810_v25  ;;  %3514 = vmatmul.mubr.msk.bf16.vlgmr.msra.gmra.mrb[140].mxu0 %vm431_vm2, %v2542_v21  ;;  %3536 = vmatmul.mubr.msk.bf16.vlgmr.msra.gmra.mrb[140].mxu1 %vm431_vm2, %v2656_v24 }
 0x141   : > { %3517 = vmatprep.mubr.msk.bf16.mxu0 %vm3674_vm1, %v3673_v26  ;;  %3539 = vmatprep.mubr.msk.bf16.mxu1 %vm3674_vm1, %v3673_v26 }
 0x143   : > { %v797_v29 = vpop.f32.mrb[36].mxu0  ;;  %v972_v34 = vpop.f32.mrb[36].mxu1 }
 0x144   : > { %v811_v32 = vadd.f32 %v797_v29, %v4244_v48  ;;  %v3267_v35 = vpop.f32.mrb[37].mxu0  ;;  %v3289_v39 = vpop.f32.mrb[37].mxu1  ;;  %v2659_v48 = vrot.slane %v4236_v38, 1  ;;  %v2547_v38 = vrot.slane %v4255_v4, 1 }
 0x145   : > { %v800_v40 = vpop.f32.mrb[38].mxu0  ;;  %v975_v44 = vpop.f32.mrb[38].mxu1 }
 0x146   : > { %v4332_v43 = vadd.f32 %v972_v34, %v811_v32  ;;  %v3268_v46 = vpop.f32.mrb[39].mxu0  ;;  %v3290_v51 = vpop.f32.mrb[39].mxu1  ;;  %v2660_v1 = vsel %vm1961_vm4, %v2657_v16, %v2659_v48  ;;  %v2548_v13 = vsel %vm1961_vm4, %v2545_v61, %v2547_v38 }
 0x148   : > { %3518 = vmatmul.mubr.msk.bf16.gmra.mrb[144].mxu0 %vm431_vm2, %v2544_v41  ;;  %3540 = vmatmul.mubr.msk.bf16.gmra.mrb[144].mxu1 %vm431_vm2, %v2658_v52 }
 0x149   : > { %3521 = vmatprep.mubr.msk.bf16.mxu0 %vm3674_vm1, %v3673_v26  ;;  %3543 = vmatprep.mubr.msk.bf16.mxu1 %vm3674_vm1, %v3673_v26 }
 0x14b   : > { %v1074_v53 = vpop.f32.mrb[40].mxu0  ;;  %v1208_v55 = vpop.f32.mrb[40].mxu1 }
 0x14c   : > { %v1112_v36 = vadd.f32 %v1074_v53, %v4267_v15  ;;  %v3295_v45 = vpop.f32.mrb[41].mxu0  ;;  %v3317_v57 = vpop.f32.mrb[41].mxu1  ;;  %v2661_v15 = vrot.slane %v4260_v50, 1 }
 0x14d   : > { %v1077_v58 = vpop.f32.mrb[42].mxu0  ;;  %v1211_v0 = vpop.f32.mrb[42].mxu1 }
 0x14e   : > { %v4345_v62 = vadd.f32 %v1208_v55, %v1112_v36  ;;  %v1113_v63 = vadd.f32 %v1077_v58, %v4272_v23  ;;  %v3296_v37 = vpop.f32.mrb[43].mxu0  ;;  %v3318_v2 = vpop.f32.mrb[43].mxu1  ;;  %v2662_v4 = vsel %vm1961_vm4, %v2659_v48, %v2661_v15 }
 0x150   : > { %v4349_v3 = vadd.f32 %v1211_v0, %v1113_v63  ;;  %3522 = vmatmul.mubr.msk.bf16.gmra.mrb[148].mxu0 %vm431_vm2, %v2546_v60  ;;  %3544 = vmatmul.mubr.msk.bf16.gmra.mrb[148].mxu1 %vm431_vm2, %v2660_v1 }
 0x151   : > { %3525 = vmatprep.mubr.msk.bf16.mxu0 %vm3674_vm1, %v3673_v26  ;;  %3547 = vmatprep.mubr.msk.bf16.mxu1 %vm3674_vm1, %v3673_v26 }
 0x153   : > { %v1082_v23 = vpop.f32.mrb[44].mxu0  ;;  %v1216_v59 = vpop.f32.mrb[44].mxu1 }
 0x154   : > { %v1114_v6 = vadd.f32 %v1082_v23, %v4282_v42  ;;  %v3299_v8 = vpop.f32.mrb[45].mxu0  ;;  %v3321_v10 = vpop.f32.mrb[45].mxu1 }
 0x155   : > { %v1085_v11 = vpop.f32.mrb[46].mxu0  ;;  %v1219_v5 = vpop.f32.mrb[46].mxu1 }
 0x156   : > { %v1248_v56 = vadd.f32 %v1216_v59, %v1114_v6  ;;  %v1115_v30 = vadd.f32 %v1085_v11, %v4286_v54  ;;  %v3300_v12 = vpop.f32.mrb[47].mxu0  ;;  %v3322_v33 = vpop.f32.mrb[47].mxu1 }
 0x158   : > { %v1249_v14 = vadd.f32 %v1219_v5, %v1115_v30  ;;  %3526 = vmatmul.mubr.msk.bf16.gmra.mrb[152].mxu0 %vm431_vm2, %v2548_v13  ;;  %3548 = vmatmul.mubr.msk.bf16.gmra.mrb[152].mxu1 %vm431_vm2, %v2662_v4 }
 0x159   : > { %3529 = vmatprep.mubr.msk.bf16.mxu0 %vm3674_vm1, %v3673_v26  ;;  %3551 = vmatprep.mubr.msk.bf16.mxu1 %vm3674_vm1, %v3673_v26 }
 0x15b   : > { %v1090_v50 = vpop.f32.mrb[48].mxu0  ;;  %v1224_v54 = vpop.f32.mrb[48].mxu1 }
 0x15c   : > { %v1116_v42 = vadd.f32 %v1090_v50, %v4300_v7  ;;  %v3303_v18 = vpop.f32.mrb[49].mxu0  ;;  %v3325_v19 = vpop.f32.mrb[49].mxu1 }
 0x15d   : > { %v1093_v20 = vpop.f32.mrb[50].mxu0  ;;  %v1227_v25 = vpop.f32.mrb[50].mxu1 }
 0x15e   : > { %v1250_v17 = vadd.f32 %v1224_v54, %v1116_v42  ;;  %v1117_v21 = vadd.f32 %v1093_v20, %v4304_v9  ;;  %v3304_v47 = vpop.f32.mrb[51].mxu0  ;;  %v3326_v27 = vpop.f32.mrb[51].mxu1 }
 0x160   : > { %v1251_v24 = vadd.f32 %v1227_v25, %v1117_v21  ;;  %3530 = vmatmul.mubr.msk.bf16.gmra.mrb[156].mxu0 %vm431_vm2, %v2547_v38  ;;  %3552 = vmatmul.mubr.msk.bf16.gmra.mrb[156].mxu1 %vm431_vm2, %v2661_v15 }
 0x163   : > { %v1098_v28 = vpop.f32.mrb[52].mxu0  ;;  %v1232_v49 = vpop.f32.mrb[52].mxu1 }
 0x164   : > { %v1118_v26 = vadd.f32 %v1098_v28, %v4316_v22  ;;  %v3307_v7 = vpop.f32.mrb[53].mxu0  ;;  %v3329_v16 = vpop.f32.mrb[53].mxu1 }
 0x165   : > { %v1101_v29 = vpop.f32.mrb[54].mxu0  ;;  %v1235_v35 = vpop.f32.mrb[54].mxu1 }
 0x166   : > { %v1252_v32 = vadd.f32 %v1232_v49, %v1118_v26  ;;  %v1119_v34 = vadd.f32 %v1101_v29, %v4320_v31  ;;  %v3308_v9 = vpop.f32.mrb[55].mxu0  ;;  %v3330_v39 = vpop.f32.mrb[55].mxu1 }
 0x168   : > { %v1253_v40 = vadd.f32 %v1235_v35, %v1119_v34 }
 0x16b   : > { %v1106_v41 = vpop.f32.mrb[56].mxu0  ;;  %v1240_v46 = vpop.f32.mrb[56].mxu1 }
 0x16c   : > { %v1120_v44 = vadd.f32 %v1106_v41, %v4332_v43  ;;  %v3311_v52 = vpop.f32.mrb[57].mxu0  ;;  %v3333_v51 = vpop.f32.mrb[57].mxu1 }
 0x16d   : > { %v1109_v61 = vpop.f32.mrb[58].mxu0  ;;  %v1243_v22 = vpop.f32.mrb[58].mxu1 }
 0x16e   : > { %v1254_v48 = vadd.f32 %v1240_v46, %v1120_v44  ;;  %v3312_v53 = vpop.f32.mrb[59].mxu0  ;;  %v3334_v36 = vpop.f32.mrb[59].mxu1 }
 0x173   : > { %v1383_v55 = vpop.f32.mrb[60].mxu0  ;;  %v1558_v57 = vpop.f32.mrb[60].mxu1 }
 0x174   : > { %v1421_v45 = vadd.f32 %v1383_v55, %v4345_v62  ;;  %v3339_v31 = vpop.f32.mrb[61].mxu0  ;;  %v3361_v58 = vpop.f32.mrb[61].mxu1 }
 0x175   : > { %v1386_v60 = vpop.f32.mrb[62].mxu0  ;;  %v1561_v37 = vpop.f32.mrb[62].mxu1 }
 0x176   : > { %v1596_v63 = vadd.f32 %v1558_v57, %v1421_v45  ;;  %v1422_v0 = vadd.f32 %v1386_v60, %v4349_v3  ;;  %v3340_v43 = vpop.f32.mrb[63].mxu0  ;;  %v3362_v1 = vpop.f32.mrb[63].mxu1 }
 0x178   : > { %v1597_v2 = vadd.f32 %v1561_v37, %v1422_v0 }
 0x17b   : > { %v1391_v38 = vpop.f32.mrb[64].mxu0  ;;  %v1566_v23 = vpop.f32.mrb[64].mxu1 }
 0x17c   : > { %v1423_v15 = vadd.f32 %v1391_v38, %v1248_v56  ;;  %v3343_v6 = vpop.f32.mrb[65].mxu0  ;;  %v3365_v59 = vpop.f32.mrb[65].mxu1 }
 0x17d   : > { %v1394_v8 = vpop.f32.mrb[66].mxu0  ;;  %v1569_v62 = vpop.f32.mrb[66].mxu1 }
 0x17e   : > { %v1598_v10 = vadd.f32 %v1566_v23, %v1423_v15  ;;  %v1424_v11 = vadd.f32 %v1394_v8, %v1249_v14  ;;  %v3344_v13 = vpop.f32.mrb[67].mxu0  ;;  %v3366_v30 = vpop.f32.mrb[67].mxu1 }
 0x180   : > { %v1599_v5 = vadd.f32 %v1569_v62, %v1424_v11 }
 0x183   : > { %v1399_v12 = vpop.f32.mrb[68].mxu0  ;;  %v1574_v33 = vpop.f32.mrb[68].mxu1 }
 0x184   : > { %v1425_v4 = vadd.f32 %v1399_v12, %v1250_v17  ;;  %v3347_v3 = vpop.f32.mrb[69].mxu0  ;;  %v3369_v50 = vpop.f32.mrb[69].mxu1 }
 0x185   : > { %v1402_v42 = vpop.f32.mrb[70].mxu0  ;;  %v1577_v19 = vpop.f32.mrb[70].mxu1 }
 0x186   : > { %v1600_v54 = vadd.f32 %v1574_v33, %v1425_v4  ;;  %v1426_v18 = vadd.f32 %v1402_v42, %v1251_v24  ;;  %v3348_v56 = vpop.f32.mrb[71].mxu0  ;;  %v3370_v20 = vpop.f32.mrb[71].mxu1 }
 0x188   : > { %v1601_v21 = vadd.f32 %v1577_v19, %v1426_v18 }
 0x18b   : > { %v1407_v25 = vpop.f32.mrb[72].mxu0  ;;  %v1582_v27 = vpop.f32.mrb[72].mxu1 }
 0x18c   : > { %v1427_v47 = vadd.f32 %v1407_v25, %v1252_v32  ;;  %v3351_v14 = vpop.f32.mrb[73].mxu0  ;;  %v3373_v28 = vpop.f32.mrb[73].mxu1 }
 0x18d   : > { %v1410_v26 = vpop.f32.mrb[74].mxu0  ;;  %v1585_v16 = vpop.f32.mrb[74].mxu1 }
 0x18e   : > { %v1602_v49 = vadd.f32 %v1582_v27, %v1427_v47  ;;  %v1428_v7 = vadd.f32 %v1410_v26, %v1253_v40  ;;  %v3352_v17 = vpop.f32.mrb[75].mxu0  ;;  %v3374_v29 = vpop.f32.mrb[75].mxu1 }
 0x190   : > { %v1603_v34 = vadd.f32 %v1585_v16, %v1428_v7 }
 0x193   : > { %v1415_v35 = vpop.f32.mrb[76].mxu0  ;;  %v1590_v39 = vpop.f32.mrb[76].mxu1 }
 0x194   : > { %v1429_v9 = vadd.f32 %v1415_v35, %v1254_v48  ;;  %v3355_v24 = vpop.f32.mrb[77].mxu0  ;;  %v3377_v41 = vpop.f32.mrb[77].mxu1 }
 0x195   : > { %v1418_v44 = vpop.f32.mrb[78].mxu0  ;;  %v1593_v52 = vpop.f32.mrb[78].mxu1 }
 0x196   : > { %v1604_v46 = vadd.f32 %v1590_v39, %v1429_v9  ;;  %v3356_v51 = vpop.f32.mrb[79].mxu0  ;;  %v3378_v32 = vpop.f32.mrb[79].mxu1 }
 0x19b   : > { %v1733_v61 = vpop.f32.mrb[80].mxu0  ;;  %v1908_v53 = vpop.f32.mrb[80].mxu1 }
 0x19c   : > { %v1771_v22 = vadd.f32 %v1733_v61, %v1596_v63  ;;  %v3383_v36 = vpop.f32.mrb[81].mxu0  ;;  %v3405_v55 = vpop.f32.mrb[81].mxu1 }
 0x19d   : > { %v1736_v40 = vpop.f32.mrb[82].mxu0  ;;  %v1911_v31 = vpop.f32.mrb[82].mxu1 }
 0x19e   : > { %v1946_v45 = vadd.f32 %v1908_v53, %v1771_v22  ;;  %v1772_v57 = vadd.f32 %v1736_v40, %v1597_v2  ;;  %v3384_v58 = vpop.f32.mrb[83].mxu0  ;;  %v3406_v60 = vpop.f32.mrb[83].mxu1 }
 0x1a0   : > { %v1947_v48 = vadd.f32 %v1911_v31, %v1772_v57 }
 0x1a3   : > { %v1741_v0 = vpop.f32.mrb[84].mxu0  ;;  %v1916_v43 = vpop.f32.mrb[84].mxu1 }
 0x1a4   : > { %v1773_v37 = vadd.f32 %v1741_v0, %v1598_v10  ;;  %v3387_v1 = vpop.f32.mrb[85].mxu0  ;;  %v3409_v38 = vpop.f32.mrb[85].mxu1 }
 0x1a5   : > { %v1744_v15 = vpop.f32.mrb[86].mxu0  ;;  %v1919_v59 = vpop.f32.mrb[86].mxu1 }
 0x1a6   : > { %v1948_v23 = vadd.f32 %v1916_v43, %v1773_v37  ;;  %v1774_v6 = vadd.f32 %v1744_v15, %v1599_v5  ;;  %v3388_v63 = vpop.f32.mrb[87].mxu0  ;;  %v3410_v8 = vpop.f32.mrb[87].mxu1 }
 0x1a8   : > { %v1949_v11 = vadd.f32 %v1919_v59, %v1774_v6 }
 0x1ab   : > { %v1749_v62 = vpop.f32.mrb[88].mxu0  ;;  %v1924_v30 = vpop.f32.mrb[88].mxu1 }
 0x1ac   : > { %v1775_v13 = vadd.f32 %v1749_v62, %v1600_v54  ;;  %v3391_v2 = vpop.f32.mrb[89].mxu0  ;;  %v3413_v12 = vpop.f32.mrb[89].mxu1 }
 0x1ad   : > { %v1752_v4 = vpop.f32.mrb[90].mxu0  ;;  %v1927_v50 = vpop.f32.mrb[90].mxu1 }
 0x1ae   : > { %v1950_v33 = vadd.f32 %v1924_v30, %v1775_v13  ;;  %v1776_v3 = vadd.f32 %v1752_v4, %v1601_v21  ;;  %v3392_v10 = vpop.f32.mrb[91].mxu0  ;;  %v3414_v42 = vpop.f32.mrb[91].mxu1 }
 0x1b0   : > { %v1951_v18 = vadd.f32 %v1927_v50, %v1776_v3 }
 0x1b3   : > { %v1757_v19 = vpop.f32.mrb[92].mxu0  ;;  %v1932_v20 = vpop.f32.mrb[92].mxu1 }
 0x1b4   : > { %v1777_v56 = vadd.f32 %v1757_v19, %v1602_v49  ;;  %v3395_v5 = vpop.f32.mrb[93].mxu0  ;;  %v3417_v25 = vpop.f32.mrb[93].mxu1 }
 0x1b5   : > { %v1760_v47 = vpop.f32.mrb[94].mxu0  ;;  %v1935_v28 = vpop.f32.mrb[94].mxu1 }
 0x1b6   : > { %v1952_v27 = vadd.f32 %v1932_v20, %v1777_v56  ;;  %v1778_v14 = vadd.f32 %v1760_v47, %v1603_v34  ;;  %v3396_v54 = vpop.f32.mrb[95].mxu0  ;;  %v3418_v26 = vpop.f32.mrb[95].mxu1 }
 0x1b8   : > { %v1953_v7 = vadd.f32 %v1935_v28, %v1778_v14 }
 0x1bb   : > { %v1765_v16 = vpop.f32.mrb[96].mxu0  ;;  %v1940_v29 = vpop.f32.mrb[96].mxu1 }
 0x1bc   : > { %v1779_v17 = vadd.f32 %v1765_v16, %v1604_v46  ;;  %v3399_v21 = vpop.f32.mrb[97].mxu0  ;;  %v3421_v35 = vpop.f32.mrb[97].mxu1 }
 0x1bd   : > { %v1768_v9 = vpop.f32.mrb[98].mxu0  ;;  %v1943_v24 = vpop.f32.mrb[98].mxu1 }
 0x1be   : > { %v1954_v39 = vadd.f32 %v1940_v29, %v1779_v17  ;;  %v3400_v41 = vpop.f32.mrb[99].mxu0  ;;  %v3422_v49 = vpop.f32.mrb[99].mxu1 }
 0x1c3   : > { %v2023_v44 = vpop.f32.mrb[100].mxu0  ;;  %v2137_v51 = vpop.f32.mrb[100].mxu1 }
 0x1c4   : > { %v2061_v52 = vadd.f32 %v2023_v44, %v1946_v45  ;;  %v3427_v32 = vpop.f32.mrb[101].mxu0  ;;  %v3449_v61 = vpop.f32.mrb[101].mxu1 }
 0x1c5   : > { %v2026_v34 = vpop.f32.mrb[102].mxu0  ;;  %v2140_v36 = vpop.f32.mrb[102].mxu1 }
 0x1c6   : > { %v2175_v22 = vadd.f32 %v2137_v51, %v2061_v52  ;;  %v2062_v53 = vadd.f32 %v2026_v34, %v1947_v48  ;;  %v3428_v55 = vpop.f32.mrb[103].mxu0  ;;  %v3450_v40 = vpop.f32.mrb[103].mxu1 }
 0x1c8   : > { %v2176_v46 = vadd.f32 %v2140_v36, %v2062_v53 }
 0x1cb   : > { %v2031_v57 = vpop.f32.mrb[104].mxu0  ;;  %v2145_v58 = vpop.f32.mrb[104].mxu1 }
 0x1cc   : > { %v2063_v31 = vadd.f32 %v2031_v57, %v1948_v23  ;;  %v3431_v60 = vpop.f32.mrb[105].mxu0  ;;  %v3453_v0 = vpop.f32.mrb[105].mxu1 }
 0x1cd   : > { %v2034_v37 = vpop.f32.mrb[106].mxu0  ;;  %v2148_v38 = vpop.f32.mrb[106].mxu1 }
 0x1ce   : > { %v2177_v43 = vadd.f32 %v2145_v58, %v2063_v31  ;;  %v2064_v1 = vadd.f32 %v2034_v37, %v1949_v11  ;;  %v3432_v45 = vpop.f32.mrb[107].mxu0  ;;  %v3454_v15 = vpop.f32.mrb[107].mxu1 }
 0x1d0   : > { %v2178_v6 = vadd.f32 %v2148_v38, %v2064_v1 }
 0x1d3   : > { %v2039_v59 = vpop.f32.mrb[108].mxu0  ;;  %v2153_v8 = vpop.f32.mrb[108].mxu1 }
 0x1d4   : > { %v2065_v63 = vadd.f32 %v2039_v59, %v1950_v33  ;;  %v3435_v48 = vpop.f32.mrb[109].mxu0  ;;  %v3457_v62 = vpop.f32.mrb[109].mxu1 }
 0x1d5   : > { %v2042_v13 = vpop.f32.mrb[110].mxu0  ;;  %v2156_v12 = vpop.f32.mrb[110].mxu1 }
 0x1d6   : > { %v2179_v30 = vadd.f32 %v2153_v8, %v2065_v63  ;;  %v2066_v2 = vadd.f32 %v2042_v13, %v1951_v18  ;;  %v3436_v23 = vpop.f32.mrb[111].mxu0  ;;  %v3458_v4 = vpop.f32.mrb[111].mxu1 }
 0x1d8   : > { %v2180_v3 = vadd.f32 %v2156_v12, %v2066_v2 }
 0x1db   : > { %v2047_v50 = vpop.f32.mrb[112].mxu0  ;;  %v2161_v42 = vpop.f32.mrb[112].mxu1 }
 0x1dc   : > { %v2067_v10 = vadd.f32 %v2047_v50, %v1952_v27  ;;  %v3439_v11 = vpop.f32.mrb[113].mxu0  ;;  %v3461_v19 = vpop.f32.mrb[113].mxu1 }
 0x1dd   : > { %v2050_v56 = vpop.f32.mrb[114].mxu0  ;;  %v2164_v25 = vpop.f32.mrb[114].mxu1 }
 0x1de   : > { %v2181_v20 = vadd.f32 %v2161_v42, %v2067_v10  ;;  %v2068_v5 = vadd.f32 %v2050_v56, %v1953_v7  ;;  %v3440_v33 = vpop.f32.mrb[115].mxu0  ;;  %v3462_v47 = vpop.f32.mrb[115].mxu1 }
 0x1e0   : > { %v2182_v14 = vadd.f32 %v2164_v25, %v2068_v5 }
 0x1e3   : > { %v2055_v28 = vpop.f32.mrb[116].mxu0  ;;  %v2169_v26 = vpop.f32.mrb[116].mxu1 }
 0x1e4   : > { %v2069_v54 = vadd.f32 %v2055_v28, %v1954_v39  ;;  %v3443_v18 = vpop.f32.mrb[117].mxu0  ;;  %v3465_v16 = vpop.f32.mrb[117].mxu1 }
 0x1e5   : > { %v2058_v17 = vpop.f32.mrb[118].mxu0  ;;  %v2172_v21 = vpop.f32.mrb[118].mxu1 }
 0x1e6   : > { %v2183_v29 = vadd.f32 %v2169_v26, %v2069_v54  ;;  %v3444_v35 = vpop.f32.mrb[119].mxu0  ;;  %v3466_v27 = vpop.f32.mrb[119].mxu1 }
 0x1eb   : > { %v2312_v9 = vpop.f32.mrb[120].mxu0  ;;  %v2487_v41 = vpop.f32.mrb[120].mxu1 }
 0x1ec   : > { %v2350_v24 = vadd.f32 %v2312_v9, %v2175_v22  ;;  %v3471_v49 = vpop.f32.mrb[121].mxu0  ;;  %v3493_v44 = vpop.f32.mrb[121].mxu1 }
 0x1ed   : > { %v2315_v7 = vpop.f32.mrb[122].mxu0  ;;  %v2490_v32 = vpop.f32.mrb[122].mxu1 }
 0x1ee   : > { %v2525_v52 = vadd.f32 %v2487_v41, %v2350_v24  ;;  %v2351_v51 = vadd.f32 %v2315_v7, %v2176_v46  ;;  %v3472_v61 = vpop.f32.mrb[123].mxu0  ;;  %v3494_v34 = vpop.f32.mrb[123].mxu1 }
 0x1f0   : > { %v2526_v39 = vadd.f32 %v2490_v32, %v2351_v51 }
 0x1f3   : > { %v2320_v53 = vpop.f32.mrb[124].mxu0  ;;  %v2495_v55 = vpop.f32.mrb[124].mxu1 }
 0x1f4   : > { %v2352_v36 = vadd.f32 %v2320_v53, %v2177_v43  ;;  %v3475_v40 = vpop.f32.mrb[125].mxu0  ;;  %v3497_v57 = vpop.f32.mrb[125].mxu1 }
 0x1f5   : > { %v2323_v31 = vpop.f32.mrb[126].mxu0  ;;  %v2498_v0 = vpop.f32.mrb[126].mxu1 }
 0x1f6   : > { %v2527_v58 = vadd.f32 %v2495_v55, %v2352_v36  ;;  %v2353_v60 = vadd.f32 %v2323_v31, %v2178_v6  ;;  %v3476_v22 = vpop.f32.mrb[127].mxu0  ;;  %v3498_v37 = vpop.f32.mrb[127].mxu1 }
 0x1f8   : > { %v4378_v1 = vadd.f32 %v2498_v0, %v2353_v60 }
 0x1fb   : > { %v2328_v38 = vpop.f32.mrb[128].mxu0  ;;  %v2503_v46 = vpop.f32.mrb[128].mxu1 }
 0x1fc   : > { %v2354_v45 = vadd.f32 %v2328_v38, %v2179_v30  ;;  %v3479_v15 = vpop.f32.mrb[129].mxu0  ;;  %v3501_v59 = vpop.f32.mrb[129].mxu1 }
 0x1fd   : > { %v2331_v63 = vpop.f32.mrb[130].mxu0  ;;  %v2506_v48 = vpop.f32.mrb[130].mxu1 }
 0x1fe   : > { %v4380_v8 = vadd.f32 %v2503_v46, %v2354_v45  ;;  %v2355_v43 = vadd.f32 %v2331_v63, %v2180_v3  ;;  %v3480_v62 = vpop.f32.mrb[131].mxu0  ;;  %v3502_v13 = vpop.f32.mrb[131].mxu1 }
 0x200   : > { %v4382_v2 = vadd.f32 %v2506_v48, %v2355_v43 }
 0x203   : > { %v2336_v6 = vpop.f32.mrb[132].mxu0  ;;  %v2511_v23 = vpop.f32.mrb[132].mxu1 }
 0x204   : > { %v2356_v12 = vadd.f32 %v2336_v6, %v2181_v20  ;;  %v3483_v4 = vpop.f32.mrb[133].mxu0  ;;  %v3505_v50 = vpop.f32.mrb[133].mxu1 }
 0x205   : > { %v2339_v10 = vpop.f32.mrb[134].mxu0  ;;  %v2514_v11 = vpop.f32.mrb[134].mxu1 }
 0x206   : > { %v4384_v30 = vadd.f32 %v2511_v23, %v2356_v12  ;;  %v2357_v42 = vadd.f32 %v2339_v10, %v2182_v14  ;;  %v3484_v19 = vpop.f32.mrb[135].mxu0  ;;  %v3506_v56 = vpop.f32.mrb[135].mxu1 }
 0x208   : > { %v4386_v3 = vadd.f32 %v2514_v11, %v2357_v42 }
 0x20b   : > { %v2344_v5 = vpop.f32.mrb[136].mxu0  ;;  %v2519_v33 = vpop.f32.mrb[136].mxu1 }
 0x20c   : > { %v2358_v25 = vadd.f32 %v2344_v5, %v2183_v29  ;;  %v3487_v47 = vpop.f32.mrb[137].mxu0  ;;  %v3509_v20 = vpop.f32.mrb[137].mxu1  ;;  %v4397_v29 = vld [vmem:[%s4449_s2] ss:$0 sm:$0xff] }
 0x20d   : > { %v2347_v28 = vpop.f32.mrb[138].mxu0  ;;  %v2522_v26 = vpop.f32.mrb[138].mxu1 }
 0x20e   : > { %v4390_v54 = vadd.f32 %v2519_v33, %v2358_v25  ;;  %v3488_v18 = vpop.f32.mrb[139].mxu0  ;;  %v3510_v16 = vpop.f32.mrb[139].mxu1 }
 0x213   : > { %v2601_v14 = vpop.f32.mrb[140].mxu0  ;;  %v2715_v21 = vpop.f32.mrb[140].mxu1 }
 0x214   : > { %v2639_v17 = vadd.f32 %v2601_v14, %v2525_v52  ;;  %v3515_v35 = vpop.f32.mrb[141].mxu0  ;;  %v3537_v27 = vpop.f32.mrb[141].mxu1 }
 0x215   : > { %v2604_v9 = vpop.f32.mrb[142].mxu0  ;;  %v2718_v49 = vpop.f32.mrb[142].mxu1 }
 0x216   : > { %v2753_v24 = vadd.f32 %v2715_v21, %v2639_v17  ;;  %v2640_v41 = vadd.f32 %v2604_v9, %v2526_v39  ;;  %v3516_v44 = vpop.f32.mrb[143].mxu0  ;;  %v3538_v7 = vpop.f32.mrb[143].mxu1 }
 0x218   : > { %v2769_v52 = vadd.f32 %v4397_v29, %v2753_v24  ;;  %v2754_v51 = vadd.f32 %v2718_v49, %v2640_v41 }
 0x21a   : > { %2778 = vst.msk [vmem:[%s4402_s14] sm:$0xff] %vm431_vm2, %v2769_v52  ;;  %v2770_v32 = vadd.f32 %v4397_v29, %v2754_v51 }
 0x21b   : > { %v2609_v61 = vpop.f32.mrb[144].mxu0  ;;  %v2723_v39 = vpop.f32.mrb[144].mxu1 }
 0x21c   : > { %2779 = vst.msk [vmem:[%s4402_s14 + $0x8] sm:$0xff] %vm431_vm2, %v2770_v32  ;;  %v2641_v34 = vadd.f32 %v2609_v61, %v2527_v58  ;;  %v3519_v53 = vpop.f32.mrb[145].mxu0  ;;  %v3541_v36 = vpop.f32.mrb[145].mxu1 }
 0x21d   : > { %v2612_v55 = vpop.f32.mrb[146].mxu0  ;;  %v2726_v31 = vpop.f32.mrb[146].mxu1 }
 0x21e   : > { %v2755_v40 = vadd.f32 %v2723_v39, %v2641_v34  ;;  %v2642_v57 = vadd.f32 %v2612_v55, %v4378_v1  ;;  %v3520_v60 = vpop.f32.mrb[147].mxu0  ;;  %v3542_v0 = vpop.f32.mrb[147].mxu1 }
 0x220   : > { %v2771_v22 = vadd.f32 %v4397_v29, %v2755_v40  ;;  %v2756_v37 = vadd.f32 %v2726_v31, %v2642_v57 }
 0x222   : > { %2780 = vst.msk [vmem:[%s4402_s14 + $0x10] sm:$0xff] %vm431_vm2, %v2771_v22  ;;  %v2772_v38 = vadd.f32 %v4397_v29, %v2756_v37 }
 0x223   : > { %v2617_v45 = vpop.f32.mrb[148].mxu0  ;;  %v2731_v46 = vpop.f32.mrb[148].mxu1 }
 0x224   : > { %2781 = vst.msk [vmem:[%s4402_s14 + $0x18] sm:$0xff] %vm431_vm2, %v2772_v38  ;;  %v2643_v58 = vadd.f32 %v2617_v45, %v4380_v8  ;;  %v3523_v15 = vpop.f32.mrb[149].mxu0  ;;  %v3545_v1 = vpop.f32.mrb[149].mxu1 }
 0x225   : > { %v2620_v59 = vpop.f32.mrb[150].mxu0  ;;  %v2734_v48 = vpop.f32.mrb[150].mxu1 }
 0x226   : > { %v2757_v63 = vadd.f32 %v2731_v46, %v2643_v58  ;;  %v2644_v43 = vadd.f32 %v2620_v59, %v4382_v2  ;;  %v3524_v62 = vpop.f32.mrb[151].mxu0  ;;  %v3546_v13 = vpop.f32.mrb[151].mxu1 }
 0x228   : > { %v2773_v6 = vadd.f32 %v4397_v29, %v2757_v63  ;;  %v2758_v12 = vadd.f32 %v2734_v48, %v2644_v43 }
 0x22a   : > { %2782 = vst.msk [vmem:[%s4402_s14 + $0x20] sm:$0xff] %vm431_vm2, %v2773_v6  ;;  %v2774_v23 = vadd.f32 %v4397_v29, %v2758_v12 }
 0x22b   : > { %v2625_v4 = vpop.f32.mrb[152].mxu0  ;;  %v2739_v50 = vpop.f32.mrb[152].mxu1 }
 0x22c   : > { %2783 = vst.msk [vmem:[%s4402_s14 + $0x28] sm:$0xff] %vm431_vm2, %v2774_v23  ;;  %v2645_v8 = vadd.f32 %v2625_v4, %v4384_v30  ;;  %v3527_v10 = vpop.f32.mrb[153].mxu0  ;;  %v3549_v2 = vpop.f32.mrb[153].mxu1 }
 0x22d   : > { %v2628_v42 = vpop.f32.mrb[154].mxu0  ;;  %v2742_v56 = vpop.f32.mrb[154].mxu1 }
 0x22e   : > { %v2759_v11 = vadd.f32 %v2739_v50, %v2645_v8  ;;  %v2646_v19 = vadd.f32 %v2628_v42, %v4386_v3  ;;  %v3528_v5 = vpop.f32.mrb[155].mxu0  ;;  %v3550_v25 = vpop.f32.mrb[155].mxu1 }
 0x230   : > { %v2775_v33 = vadd.f32 %v4397_v29, %v2759_v11  ;;  %v2760_v47 = vadd.f32 %v2742_v56, %v2646_v19 }
 0x232   : > { %2784 = vst.msk [vmem:[%s4402_s14 + $0x30] sm:$0xff] %vm431_vm2, %v2775_v33  ;;  %v2776_v20 = vadd.f32 %v4397_v29, %v2760_v47 }
 0x233   : > { %v2633_v28 = vpop.f32.mrb[156].mxu0  ;;  %v2747_v26 = vpop.f32.mrb[156].mxu1 }
 0x234   : > { %2785 = vst.msk [vmem:[%s4402_s14 + $0x38] sm:$0xff] %vm431_vm2, %v2776_v20  ;;  %v2647_v30 = vadd.f32 %v2633_v28, %v4390_v54  ;;  %v3531_v18 = vpop.f32.mrb[157].mxu0  ;;  %v3553_v16 = vpop.f32.mrb[157].mxu1 }
 0x235   : > { %v2636_v3 = vpop.f32.mrb[158].mxu0  ;;  %v2750_v17 = vpop.f32.mrb[158].mxu1 }
 0x236   : > { %v2761_v14 = vadd.f32 %v2747_v26, %v2647_v30  ;;  %v3532_v21 = vpop.f32.mrb[159].mxu0  ;;  %v3554_v35 = vpop.f32.mrb[159].mxu1 }
 0x238   : > { %v2777_v27 = vadd.f32 %v4397_v29, %v2761_v14 }
 0x23a   : > { %2786 = vst.msk [vmem:[%s4402_s14 + $0x40] sm:$0xff] %vm431_vm2, %v2777_v27 }
 0x23b PF: > { %p10_p9 = scmp.ge.s32.totalorder %s3712_s16, 4   ;;  %s4451_s12 = smov %s3667_s13 }
 0x23c   : > { %s4452_s13 = smov %s3721_s19  ;;  %s4453_s14 = smov %s3712_s16 }
 0x23d   :  { %12 = sbr.rel (!%p10_p9) target bundleno = 2 (0x2), region = 126 }

</bundles_post_ra>
